<compile_context>
chip_gen: v7x
topology: tpu7x:2x2x1
jax: 0.10.0
libtpu: 0.0.40
codegen_flags: <defaults>
</compile_context>

<pallas_src>
import functools

import jax
import jax.numpy as jnp
import numpy as np
from jax.experimental import pallas as pl
from jax.experimental.pallas import tpu as pltpu


def _sign(v):
    # torch.Tensor.sign(): -1 / 0 / +1
    return jnp.where(v > 0, 1.0, jnp.where(v < 0, -1.0, 0.0))


def _hardtanh(v):
    return jnp.clip(v, -1.0, 1.0)


def _mobilenet_block_kernel(
    x_ref,       # (Cin, L)       input block, L = B_blk*HW (f32)
    w1_ref,      # (Cexp, Cin)    sign(conv1 w)^T, bf16
    w2_ref,      # (Cexp, K*K)    sign(depthwise w)^T, bf16
    mask_ref,    # (K*K, L)       per-tap validity masks (tiled per image), bf16
    wse2_ref,    # (Cexp, Cse)    sign(fc_se2 w), bf16 (original orientation)
    wse3t_ref,   # (Cexp, Cse)    sign(fc_se3 w)^T, bf16
    w3_ref,      # (Cout, Cexp)   sign(conv3 w)^T, bf16
    pexp_ref,    # (Cexp, 9)      packed per-Cexp affine params (f32)
    pse_ref,     # (3, Cse)       packed per-Cse affine params (f32, rows)
    pout_ref,    # (Cout, 4)      packed per-Cout affine params (f32)
    o_ref,       # (Cout, L)
    *, H, W, K, B_blk,
):
    HW = H * W
    L = B_blk * HW
    pad = (K - 1) // 2

    # ---- unpack the fused constant tables (static slices, free) ------------
    pe = pexp_ref[...]
    ps = pse_ref[...]
    po = pout_ref[...]
    bn1_s, bn1_b = pe[:, 0:1], pe[:, 1:2]
    bn2_s, bn2_b = pe[:, 2:3], pe[:, 3:4]
    se1_s, se1_b = pe[:, 4:5], pe[:, 5:6]
    bse3 = pe[:, 6:7]
    se3_s, se3_b = pe[:, 7:8], pe[:, 8:9]
    bse2, se2_s, se2_b = ps[0:1, :], ps[1:2, :], ps[2:3, :]
    bn3_s, bn3_b = po[:, 0:1], po[:, 1:2]
    bnr_s, bnr_b = po[:, 2:3], po[:, 3:4]

    x = x_ref[...]                                        # residual, full precision

    # ---- conv1 (binarized 1x1) + bn1 + hardtanh : one MXU matmul -----------
    xb = _sign(x).astype(jnp.bfloat16)                    # +/-1 exact in bf16
    h = jnp.dot(w1_ref[...], xb, preferred_element_type=jnp.float32)   # (Cexp, L)
    h = _hardtanh(h * bn1_s + bn1_b)

    # ---- conv2 (binarized depthwise KxK, stride 1) : XLU rolls + masks -----
    hs = _sign(h)                                         # computed once, reused K*K times
    w2b = w2_ref[...]                                     # (Cexp, K*K) bf16
    mask = mask_ref[...]                                  # (K*K, L)    bf16
    acc = jnp.zeros_like(h)
    t = 0
    for kh in range(K):
        for kw in range(K):
            d = (kh - pad) * W + (kw - pad)               # flat spatial offset
            if d == 0:
                shifted = hs
            else:
                # result[m] = hs[m + d]; any wrap (image edge or cross-image)
                # is zeroed by the per-tap mask below.
                shifted = pltpu.roll(hs, (-d) % L, axis=1)
            tap = shifted * w2b[:, t:t + 1]               # per-channel +/-1 weight
            if d != 0:
                tap = tap * mask[t:t + 1, :]
            acc = acc + tap
            t += 1
    h2 = _hardtanh(acc * bn2_s + bn2_b)

    # ---- squeeze-and-excite (per image, VPU/XLU only — no MXU round-trips) -
    wse2 = wse2_ref[...]                                  # (Cexp, Cse)
    wse3t = wse3t_ref[...]                                # (Cexp, Cse)
    pieces = []
    for b in range(B_blk):                                # static, B_blk <= 2
        h2b = h2[:, b * HW:(b + 1) * HW]                  # lane-aligned static slice
        se = jnp.sum(h2b, axis=1, keepdims=True) * (1.0 / HW)        # (Cexp, 1)
        se = _hardtanh(se * se1_s + se1_b)
        # fc_se2: (1, Cse) = sublane-reduce( sign(se) * W2 ) + bias
        f2 = jnp.sum(_sign(se) * wse2, axis=0, keepdims=True) + bse2
        f2 = _hardtanh(f2 * se2_s + se2_b)
        # fc_se3: (Cexp, 1) = lane-reduce( sign(f2) * W3^T ) + bias
        f3 = jnp.sum(_sign(f2) * wse3t, axis=1, keepdims=True) + bse3
        sc = jax.nn.sigmoid(f3 * se3_s + se3_b)           # (Cexp, 1), EUP exp
        pieces.append(h2b * sc)                           # lane-broadcast scale
    h2 = pieces[0] if B_blk == 1 else jnp.concatenate(pieces, axis=1)

    # ---- conv3 (binarized 1x1) + bn3 : one MXU matmul ----------------------
    xb3 = _sign(h2).astype(jnp.bfloat16)
    y = jnp.dot(w3_ref[...], xb3, preferred_element_type=jnp.float32)   # (Cout, L)
    y = y * bn3_s + bn3_b

    # ---- residual + bn_res + hardtanh (stride==1 and Cin==Cout) ------------
    y = y + x
    o_ref[...] = _hardtanh(y * bnr_s + bnr_b)


def _grid_steps_for_device(B):
    """One grid step per TensorCore: 1 on v5e/v6e, 2 on dual-TC v7x."""
    try:
        kind = jax.devices()[0].device_kind.lower()
    except Exception:
        kind = ""
    n_tc = 2 if ("v7" in kind or "7x" in kind) else 1
    g = min(B, n_tc)
    while B % g:
        g -= 1
    return max(g, 1)


def mobilenet_block_forward(x_nchw, params, K=3, grid_steps=None):
    B, Cin, H, W = x_nchw.shape
    HW = H * W
    Cexp = params["w1"].shape[1]
    Cse = params["wse2"].shape[1]
    Cout = params["w3"].shape[1]
    assert Cin == Cout, "residual path requires stride==1 and ch_in == ch_out"

    G = _grid_steps_for_device(B) if grid_steps is None else grid_steps
    assert B % G == 0
    B_blk = B // G
    L = B_blk * HW

    # NCHW -> (C, B*HW): channels on sublanes, flattened spatial on lanes.
    x_cm = jnp.transpose(x_nchw, (1, 0, 2, 3)).reshape(Cin, B * HW).astype(jnp.float32)

    # Binarize weights host-side; +-1 / 0 are exact in bf16.
    w1b = _sign(params["w1"]).T.astype(jnp.bfloat16)       # (Cexp, Cin)
    w2b = _sign(params["w2"]).T.astype(jnp.bfloat16)       # (Cexp, K*K)
    wse2b = _sign(params["wse2"]).astype(jnp.bfloat16)     # (Cexp, Cse)  (original)
    wse3tb = _sign(params["wse3"]).T.astype(jnp.bfloat16)  # (Cexp, Cse)  (transposed)
    w3b = _sign(params["w3"]).T.astype(jnp.bfloat16)       # (Cout, Cexp)

    # Per-tap validity masks (zero padding at image edges), tiled per image
    # inside one block so a single grid step can cover B_blk images.
    pad = (K - 1) // 2
    ii, jj = np.meshgrid(np.arange(H), np.arange(W), indexing="ij")
    mask1 = np.zeros((K * K, HW), np.float32)
    t = 0
    for kh in range(K):
        for kw in range(K):
            dh, dw = kh - pad, kw - pad
            valid = ((ii + dh >= 0) & (ii + dh < H) & (jj + dw >= 0) & (jj + dw < W))
            mask1[t] = valid.reshape(-1).astype(np.float32)
            t += 1
    mask_blk = jnp.asarray(np.tile(mask1, (1, B_blk)), jnp.bfloat16)   # (K*K, L)

    def col(v):
        return jnp.asarray(v, jnp.float32).reshape(-1, 1)

    def row(v):
        return jnp.asarray(v, jnp.float32).reshape(1, -1)

    # Pack all tiny per-channel affine vectors into 3 arrays.
    pexp = jnp.concatenate(
        [col(params["bn1_s"]), col(params["bn1_b"]),
         col(params["bn2_s"]), col(params["bn2_b"]),
         col(params["se1_s"]), col(params["se1_b"]),
         col(params["bse3"]),
         col(params["se3_s"]), col(params["se3_b"])], axis=1)          # (Cexp, 9)
    pse = jnp.concatenate(
        [row(params["bse2"]), row(params["se2_s"]), row(params["se2_b"])], axis=0)  # (3, Cse)
    pout = jnp.concatenate(
        [col(params["bn3_s"]), col(params["bn3_b"]),
         col(params["bnr_s"]), col(params["bnr_b"])], axis=1)          # (Cout, 4)

    args = (x_cm, w1b, w2b, mask_blk, wse2b, wse3tb, w3b, pexp, pse, pout)

    def const_spec(a):
        return pl.BlockSpec(a.shape, lambda g: (0, 0))     # resident across the grid

    in_specs = [pl.BlockSpec((Cin, L), lambda g: (0, g))]  # batch-slice block of x
    in_specs += [const_spec(a) for a in args[1:]]
    out_spec = pl.BlockSpec((Cout, L), lambda g: (0, g))   # lane-dense store

    const_bytes = int(sum(int(a.size) * a.dtype.itemsize for a in args[1:]))
    cost = pl.CostEstimate(
        flops=int(B * (2 * HW * (Cin * Cexp + Cexp * Cout)   # 1x1 convs
                       + 3 * K * K * Cexp * HW               # depthwise mul/mask/add
                       + 4 * Cexp * Cse                      # SE fcs
                       + 16 * Cexp * HW)),                   # bn/hardtanh/scale
        transcendentals=int(B * Cexp),                       # SE sigmoid
        bytes_accessed=int(x_cm.size * 4 + B * HW * Cout * 4 + const_bytes),
    )

    kernel = functools.partial(_mobilenet_block_kernel, H=H, W=W, K=K, B_blk=B_blk)

    out_cm = pl.pallas_call(
        kernel,
        out_shape=jax.ShapeDtypeStruct((Cout, B * HW), jnp.float32),
        grid=(G,),
        in_specs=in_specs,
        out_specs=out_spec,
        compiler_params=pltpu.CompilerParams(
            dimension_semantics=("parallel",),
            vmem_limit_bytes=32 * 1024 * 1024),
        cost_estimate=cost,
    )(*args)

    return jnp.transpose(out_cm.reshape(Cout, B, H, W), (1, 0, 2, 3))  # -> NCHW


def _init_params(key, Cin, Cexp, Cse, Cout, K):
    ks = jax.random.split(key, 16)

    def bn(k, C):
        k1, k2, k3, k4 = jax.random.split(k, 4)
        gamma = jax.random.uniform(k1, (C,), minval=0.5, maxval=1.5)
        beta = 0.1 * jax.random.normal(k2, (C,))
        mean = 0.1 * jax.random.normal(k3, (C,))
        var = jax.random.uniform(k4, (C,), minval=0.5, maxval=1.5)
        scale = gamma / jnp.sqrt(var + 1e-3)
        bias = beta - mean * scale
        return (scale.reshape(1, C).astype(jnp.float32),
                bias.reshape(1, C).astype(jnp.float32))

    p = {}
    p["w1"] = jax.random.normal(ks[0], (Cin, Cexp), jnp.float32)
    p["bn1_s"], p["bn1_b"] = bn(ks[1], Cexp)
    p["w2"] = jax.random.normal(ks[2], (K * K, Cexp), jnp.float32)
    p["bn2_s"], p["bn2_b"] = bn(ks[3], Cexp)
    p["se1_s"], p["se1_b"] = bn(ks[4], Cexp)
    p["wse2"] = jax.random.normal(ks[5], (Cexp, Cse), jnp.float32)
    p["bse2"] = (0.1 * jax.random.normal(ks[6], (Cse,))).reshape(1, Cse).astype(jnp.float32)
    p["se2_s"], p["se2_b"] = bn(ks[7], Cse)
    p["wse3"] = jax.random.normal(ks[8], (Cse, Cexp), jnp.float32)
    p["bse3"] = (0.1 * jax.random.normal(ks[9], (Cexp,))).reshape(1, Cexp).astype(jnp.float32)
    p["se3_s"], p["se3_b"] = bn(ks[10], Cexp)
    p["w3"] = jax.random.normal(ks[11], (Cexp, Cout), jnp.float32)
    p["bn3_s"], p["bn3_b"] = bn(ks[12], Cout)
    p["bnr_s"], p["bnr_b"] = bn(ks[13], Cout)
    return p


def _reference(x_nhwc, p, K):
    """Plain-JAX reference of the same forward pass (NHWC)."""
    B, H, W, Cin = x_nhwc.shape
    res = x_nhwc
    h = jnp.einsum("bhwi,io->bhwo", _sign(x_nhwc), _sign(p["w1"]))
    h = _hardtanh(h * p["bn1_s"] + p["bn1_b"])
    pad = (K - 1) // 2
    hp = jnp.pad(_sign(h), ((0, 0), (pad, pad), (pad, pad), (0, 0)))
    w2b = _sign(p["w2"])
    acc = jnp.zeros_like(h)
    for kh in range(K):
        for kw in range(K):
            acc = acc + hp[:, kh:kh + H, kw:kw + W, :] * w2b[kh * K + kw]
    h2 = _hardtanh(acc * p["bn2_s"] + p["bn2_b"])
    se = jnp.mean(h2, axis=(1, 2))
    se = _hardtanh(se * p["se1_s"] + p["se1_b"])
    se = _sign(se) @ _sign(p["wse2"]) + p["bse2"]
    se = _hardtanh(se * p["se2_s"] + p["se2_b"])
    se = _sign(se) @ _sign(p["wse3"]) + p["bse3"]
    se = jax.nn.sigmoid(se * p["se3_s"] + p["se3_b"])
    h2 = h2 * se[:, None, None, :]
    y = jnp.einsum("bhwi,io->bhwo", _sign(h2), _sign(p["w3"]))
    y = y * p["bn3_s"] + p["bn3_b"]
    y = y + res
    return _hardtanh(y * p["bnr_s"] + p["bnr_b"])


if __name__ == "__main__":
    key = jax.random.PRNGKey(0)
    kx, kp = jax.random.split(key)

    # MobileNetBlock(d_in=16, ch_in=8, ch_out=8, kernel=3, expansion=2,
    #                stride=1, SE_en=True)
    B, Cin, H, W = 2, 8, 16, 16
    expansion, K, Cout = 2, 3, 8
    Cexp = Cin * expansion
    Cse = int(Cin * 0.25)

    x = jax.random.normal(kx, (B, Cin, H, W), jnp.float32)
    params = _init_params(kp, Cin, Cexp, Cse, Cout, K)

    out = mobilenet_block_forward(x, params, K=K)
    out = jax.block_until_ready(out)
    assert out.shape == (B, Cout, H, W)

    # validate against a plain-JAX reference
    ref = jnp.transpose(_reference(jnp.transpose(x, (0, 2, 3, 1)), params, K),
                        (0, 3, 1, 2))
    np.testing.assert_allclose(np.asarray(out), np.asarray(ref),
                               atol=1e-4, rtol=1e-4)
    print("KERNEL_OK")
</pallas_src>

<mosaic_0001>
module attributes {stable_mosaic.version = 11 : i64} {
  func.func @_mobilenet_block_kernel(%arg0: i32, %arg1: memref<8x512xf32, #tpu.memory_space<vmem>>, %arg2: memref<16x8xbf16, #tpu.memory_space<vmem>>, %arg3: memref<16x9xbf16, #tpu.memory_space<vmem>>, %arg4: memref<9x512xbf16, #tpu.memory_space<vmem>>, %arg5: memref<16x2xbf16, #tpu.memory_space<vmem>>, %arg6: memref<16x2xbf16, #tpu.memory_space<vmem>>, %arg7: memref<8x16xbf16, #tpu.memory_space<vmem>>, %arg8: memref<16x9xf32, #tpu.memory_space<vmem>>, %arg9: memref<3x2xf32, #tpu.memory_space<vmem>>, %arg10: memref<8x4xf32, #tpu.memory_space<vmem>>, %arg11: memref<8x512xf32, #tpu.memory_space<vmem>>) attributes {dimension_semantics = [#tpu.dimension_semantics<parallel>], iteration_bounds = array<i64: 1>, scalar_prefetch = 0 : i64, scratch_operands = 0 : i64, tpu.core_type = #tpu.core_type<tc>, window_params = [{transform_indices = @transform_0, window_bounds = array<i64: 8, 512>}, {pipeline_mode = #tpu.pipeline_mode<synchronous>, transform_indices = @transform_1, window_bounds = array<i64: 16, 8>}, {pipeline_mode = #tpu.pipeline_mode<synchronous>, transform_indices = @transform_2, window_bounds = array<i64: 16, 9>}, {pipeline_mode = #tpu.pipeline_mode<synchronous>, transform_indices = @transform_3, window_bounds = array<i64: 9, 512>}, {pipeline_mode = #tpu.pipeline_mode<synchronous>, transform_indices = @transform_4, window_bounds = array<i64: 16, 2>}, {pipeline_mode = #tpu.pipeline_mode<synchronous>, transform_indices = @transform_5, window_bounds = array<i64: 16, 2>}, {pipeline_mode = #tpu.pipeline_mode<synchronous>, transform_indices = @transform_6, window_bounds = array<i64: 8, 16>}, {pipeline_mode = #tpu.pipeline_mode<synchronous>, transform_indices = @transform_7, window_bounds = array<i64: 16, 9>}, {pipeline_mode = #tpu.pipeline_mode<synchronous>, transform_indices = @transform_8, window_bounds = array<i64: 3, 2>}, {pipeline_mode = #tpu.pipeline_mode<synchronous>, transform_indices = @transform_9, window_bounds = array<i64: 8, 4>}, {transform_indices = @transform_10, window_bounds = array<i64: 8, 512>}]} {
    %c0 = arith.constant 0 : index
    %c0_0 = arith.constant 0 : index
    %0 = vector.load %arg8[%c0, %c0_0] : memref<16x9xf32, #tpu.memory_space<vmem>>, vector<16x9xf32>
    %c0_1 = arith.constant 0 : index
    %c0_2 = arith.constant 0 : index
    %1 = vector.load %arg9[%c0_1, %c0_2] : memref<3x2xf32, #tpu.memory_space<vmem>>, vector<3x2xf32>
    %c0_3 = arith.constant 0 : index
    %c0_4 = arith.constant 0 : index
    %2 = vector.load %arg10[%c0_3, %c0_4] : memref<8x4xf32, #tpu.memory_space<vmem>>, vector<8x4xf32>
    %3 = vector.extract_strided_slice %0 {offsets = [0, 0], sizes = [16, 1], strides = [1, 1]} : vector<16x9xf32> to vector<16x1xf32>
    %4 = vector.extract_strided_slice %0 {offsets = [0, 1], sizes = [16, 1], strides = [1, 1]} : vector<16x9xf32> to vector<16x1xf32>
    %5 = vector.extract_strided_slice %0 {offsets = [0, 2], sizes = [16, 1], strides = [1, 1]} : vector<16x9xf32> to vector<16x1xf32>
    %6 = vector.extract_strided_slice %0 {offsets = [0, 3], sizes = [16, 1], strides = [1, 1]} : vector<16x9xf32> to vector<16x1xf32>
    %7 = vector.extract_strided_slice %0 {offsets = [0, 4], sizes = [16, 1], strides = [1, 1]} : vector<16x9xf32> to vector<16x1xf32>
    %8 = vector.extract_strided_slice %0 {offsets = [0, 5], sizes = [16, 1], strides = [1, 1]} : vector<16x9xf32> to vector<16x1xf32>
    %9 = vector.extract_strided_slice %0 {offsets = [0, 6], sizes = [16, 1], strides = [1, 1]} : vector<16x9xf32> to vector<16x1xf32>
    %10 = vector.extract_strided_slice %0 {offsets = [0, 7], sizes = [16, 1], strides = [1, 1]} : vector<16x9xf32> to vector<16x1xf32>
    %11 = vector.extract_strided_slice %0 {offsets = [0, 8], sizes = [16, 1], strides = [1, 1]} : vector<16x9xf32> to vector<16x1xf32>
    %12 = vector.extract_strided_slice %1 {offsets = [0, 0], sizes = [1, 2], strides = [1, 1]} : vector<3x2xf32> to vector<1x2xf32>
    %13 = vector.extract_strided_slice %1 {offsets = [1, 0], sizes = [1, 2], strides = [1, 1]} : vector<3x2xf32> to vector<1x2xf32>
    %14 = vector.extract_strided_slice %1 {offsets = [2, 0], sizes = [1, 2], strides = [1, 1]} : vector<3x2xf32> to vector<1x2xf32>
    %15 = vector.extract_strided_slice %2 {offsets = [0, 0], sizes = [8, 1], strides = [1, 1]} : vector<8x4xf32> to vector<8x1xf32>
    %16 = vector.extract_strided_slice %2 {offsets = [0, 1], sizes = [8, 1], strides = [1, 1]} : vector<8x4xf32> to vector<8x1xf32>
    %17 = vector.extract_strided_slice %2 {offsets = [0, 2], sizes = [8, 1], strides = [1, 1]} : vector<8x4xf32> to vector<8x1xf32>
    %18 = vector.extract_strided_slice %2 {offsets = [0, 3], sizes = [8, 1], strides = [1, 1]} : vector<8x4xf32> to vector<8x1xf32>
    %c0_5 = arith.constant 0 : index
    %c0_6 = arith.constant 0 : index
    %19 = vector.load %arg1[%c0_5, %c0_6] : memref<8x512xf32, #tpu.memory_space<vmem>>, vector<8x512xf32>
    %cst = arith.constant 0.000000e+00 : f32
    %20 = vector.broadcast %cst : f32 to vector<8x512xf32>
    %21 = arith.cmpf ogt, %19, %20 : vector<8x512xf32>
    %cst_7 = arith.constant 0.000000e+00 : f32
    %22 = vector.broadcast %cst_7 : f32 to vector<8x512xf32>
    %23 = arith.cmpf olt, %19, %22 : vector<8x512xf32>
    %cst_8 = arith.constant -1.000000e+00 : f32
    %cst_9 = arith.constant 0.000000e+00 : f32
    %24 = vector.broadcast %cst_8 : f32 to vector<8x512xf32>
    %25 = vector.broadcast %cst_9 : f32 to vector<8x512xf32>
    %26 = arith.select %23, %24, %25 : vector<8x512xi1>, vector<8x512xf32>
    %cst_10 = arith.constant 1.000000e+00 : f32
    %27 = vector.broadcast %cst_10 : f32 to vector<8x512xf32>
    %28 = arith.select %21, %27, %26 : vector<8x512xi1>, vector<8x512xf32>
    %29 = arith.truncf %28 : vector<8x512xf32> to vector<8x512xbf16>
    %c0_11 = arith.constant 0 : index
    %c0_12 = arith.constant 0 : index
    %30 = vector.load %arg2[%c0_11, %c0_12] : memref<16x8xbf16, #tpu.memory_space<vmem>>, vector<16x8xbf16>
    %cst_13 = arith.constant dense<0.000000e+00> : vector<16x512xf32>
    %31 = tpu.matmul %30, %29, %cst_13 {dimension_numbers = #tpu.dot_dimension_numbers<[1], [0], [0], [1], [0, 0, 1, 1], [], []>} : vector<16x8xbf16>, vector<8x512xbf16>, vector<16x512xf32> -> vector<16x512xf32>
    %32 = vector.broadcast %3 : vector<16x1xf32> to vector<16x512xf32>
    %33 = arith.mulf %31, %32 : vector<16x512xf32>
    %34 = vector.broadcast %4 : vector<16x1xf32> to vector<16x512xf32>
    %35 = arith.addf %33, %34 : vector<16x512xf32>
    %cst_14 = arith.constant -1.000000e+00 : f32
    %cst_15 = arith.constant 1.000000e+00 : f32
    %36 = vector.broadcast %cst_14 : f32 to vector<16x512xf32>
    %37 = arith.maximumf %36, %35 : vector<16x512xf32>
    %38 = vector.broadcast %cst_15 : f32 to vector<16x512xf32>
    %39 = arith.minimumf %38, %37 : vector<16x512xf32>
    %cst_16 = arith.constant 0.000000e+00 : f32
    %40 = vector.broadcast %cst_16 : f32 to vector<16x512xf32>
    %41 = arith.cmpf ogt, %39, %40 : vector<16x512xf32>
    %cst_17 = arith.constant 0.000000e+00 : f32
    %42 = vector.broadcast %cst_17 : f32 to vector<16x512xf32>
    %43 = arith.cmpf olt, %39, %42 : vector<16x512xf32>
    %cst_18 = arith.constant -1.000000e+00 : f32
    %cst_19 = arith.constant 0.000000e+00 : f32
    %44 = vector.broadcast %cst_18 : f32 to vector<16x512xf32>
    %45 = vector.broadcast %cst_19 : f32 to vector<16x512xf32>
    %46 = arith.select %43, %44, %45 : vector<16x512xi1>, vector<16x512xf32>
    %cst_20 = arith.constant 1.000000e+00 : f32
    %47 = vector.broadcast %cst_20 : f32 to vector<16x512xf32>
    %48 = arith.select %41, %47, %46 : vector<16x512xi1>, vector<16x512xf32>
    %c0_21 = arith.constant 0 : index
    %c0_22 = arith.constant 0 : index
    %49 = vector.load %arg3[%c0_21, %c0_22] : memref<16x9xbf16, #tpu.memory_space<vmem>>, vector<16x9xbf16>
    %c0_23 = arith.constant 0 : index
    %c0_24 = arith.constant 0 : index
    %50 = vector.load %arg4[%c0_23, %c0_24] : memref<9x512xbf16, #tpu.memory_space<vmem>>, vector<9x512xbf16>
    %cst_25 = arith.constant 0.000000e+00 : f32
    %51 = vector.broadcast %cst_25 : f32 to vector<16x512xf32>
    %c17_i32 = arith.constant 17 : i32
    %52 = tpu.dynamic_rotate %48 by %c17_i32 dim 1 : vector<16x512xf32>, i32 -> vector<16x512xf32>
    %53 = vector.extract_strided_slice %49 {offsets = [0, 0], sizes = [16, 1], strides = [1, 1]} : vector<16x9xbf16> to vector<16x1xbf16>
    %54 = arith.truncf %52 : vector<16x512xf32> to vector<16x512xbf16>
    %55 = vector.broadcast %53 : vector<16x1xbf16> to vector<16x512xbf16>
    %56 = arith.mulf %54, %55 : vector<16x512xbf16>
    %57 = vector.extract_strided_slice %50 {offsets = [0, 0], sizes = [1, 512], strides = [1, 1]} : vector<9x512xbf16> to vector<1x512xbf16>
    %58 = vector.broadcast %57 : vector<1x512xbf16> to vector<16x512xbf16>
    %59 = arith.mulf %56, %58 : vector<16x512xbf16>
    %60 = arith.extf %59 : vector<16x512xbf16> to vector<16x512xf32>
    %61 = arith.addf %51, %60 : vector<16x512xf32>
    %c16_i32 = arith.constant 16 : i32
    %62 = tpu.dynamic_rotate %48 by %c16_i32 dim 1 : vector<16x512xf32>, i32 -> vector<16x512xf32>
    %63 = vector.extract_strided_slice %49 {offsets = [0, 1], sizes = [16, 1], strides = [1, 1]} : vector<16x9xbf16> to vector<16x1xbf16>
    %64 = arith.truncf %62 : vector<16x512xf32> to vector<16x512xbf16>
    %65 = vector.broadcast %63 : vector<16x1xbf16> to vector<16x512xbf16>
    %66 = arith.mulf %64, %65 : vector<16x512xbf16>
    %67 = vector.extract_strided_slice %50 {offsets = [1, 0], sizes = [1, 512], strides = [1, 1]} : vector<9x512xbf16> to vector<1x512xbf16>
    %68 = vector.broadcast %67 : vector<1x512xbf16> to vector<16x512xbf16>
    %69 = arith.mulf %66, %68 : vector<16x512xbf16>
    %70 = arith.extf %69 : vector<16x512xbf16> to vector<16x512xf32>
    %71 = arith.addf %61, %70 : vector<16x512xf32>
    %c15_i32 = arith.constant 15 : i32
    %72 = tpu.dynamic_rotate %48 by %c15_i32 dim 1 : vector<16x512xf32>, i32 -> vector<16x512xf32>
    %73 = vector.extract_strided_slice %49 {offsets = [0, 2], sizes = [16, 1], strides = [1, 1]} : vector<16x9xbf16> to vector<16x1xbf16>
    %74 = arith.truncf %72 : vector<16x512xf32> to vector<16x512xbf16>
    %75 = vector.broadcast %73 : vector<16x1xbf16> to vector<16x512xbf16>
    %76 = arith.mulf %74, %75 : vector<16x512xbf16>
    %77 = vector.extract_strided_slice %50 {offsets = [2, 0], sizes = [1, 512], strides = [1, 1]} : vector<9x512xbf16> to vector<1x512xbf16>
    %78 = vector.broadcast %77 : vector<1x512xbf16> to vector<16x512xbf16>
    %79 = arith.mulf %76, %78 : vector<16x512xbf16>
    %80 = arith.extf %79 : vector<16x512xbf16> to vector<16x512xf32>
    %81 = arith.addf %71, %80 : vector<16x512xf32>
    %c1_i32 = arith.constant 1 : i32
    %82 = tpu.dynamic_rotate %48 by %c1_i32 dim 1 : vector<16x512xf32>, i32 -> vector<16x512xf32>
    %83 = vector.extract_strided_slice %49 {offsets = [0, 3], sizes = [16, 1], strides = [1, 1]} : vector<16x9xbf16> to vector<16x1xbf16>
    %84 = arith.truncf %82 : vector<16x512xf32> to vector<16x512xbf16>
    %85 = vector.broadcast %83 : vector<16x1xbf16> to vector<16x512xbf16>
    %86 = arith.mulf %84, %85 : vector<16x512xbf16>
    %87 = vector.extract_strided_slice %50 {offsets = [3, 0], sizes = [1, 512], strides = [1, 1]} : vector<9x512xbf16> to vector<1x512xbf16>
    %88 = vector.broadcast %87 : vector<1x512xbf16> to vector<16x512xbf16>
    %89 = arith.mulf %86, %88 : vector<16x512xbf16>
    %90 = arith.extf %89 : vector<16x512xbf16> to vector<16x512xf32>
    %91 = arith.addf %81, %90 : vector<16x512xf32>
    %92 = vector.extract_strided_slice %49 {offsets = [0, 4], sizes = [16, 1], strides = [1, 1]} : vector<16x9xbf16> to vector<16x1xbf16>
    %93 = arith.truncf %48 : vector<16x512xf32> to vector<16x512xbf16>
    %94 = vector.broadcast %92 : vector<16x1xbf16> to vector<16x512xbf16>
    %95 = arith.mulf %93, %94 : vector<16x512xbf16>
    %96 = arith.extf %95 : vector<16x512xbf16> to vector<16x512xf32>
    %97 = arith.addf %91, %96 : vector<16x512xf32>
    %c511_i32 = arith.constant 511 : i32
    %98 = tpu.dynamic_rotate %48 by %c511_i32 dim 1 : vector<16x512xf32>, i32 -> vector<16x512xf32>
    %99 = vector.extract_strided_slice %49 {offsets = [0, 5], sizes = [16, 1], strides = [1, 1]} : vector<16x9xbf16> to vector<16x1xbf16>
    %100 = arith.truncf %98 : vector<16x512xf32> to vector<16x512xbf16>
    %101 = vector.broadcast %99 : vector<16x1xbf16> to vector<16x512xbf16>
    %102 = arith.mulf %100, %101 : vector<16x512xbf16>
    %103 = vector.extract_strided_slice %50 {offsets = [5, 0], sizes = [1, 512], strides = [1, 1]} : vector<9x512xbf16> to vector<1x512xbf16>
    %104 = vector.broadcast %103 : vector<1x512xbf16> to vector<16x512xbf16>
    %105 = arith.mulf %102, %104 : vector<16x512xbf16>
    %106 = arith.extf %105 : vector<16x512xbf16> to vector<16x512xf32>
    %107 = arith.addf %97, %106 : vector<16x512xf32>
    %c497_i32 = arith.constant 497 : i32
    %108 = tpu.dynamic_rotate %48 by %c497_i32 dim 1 : vector<16x512xf32>, i32 -> vector<16x512xf32>
    %109 = vector.extract_strided_slice %49 {offsets = [0, 6], sizes = [16, 1], strides = [1, 1]} : vector<16x9xbf16> to vector<16x1xbf16>
    %110 = arith.truncf %108 : vector<16x512xf32> to vector<16x512xbf16>
    %111 = vector.broadcast %109 : vector<16x1xbf16> to vector<16x512xbf16>
    %112 = arith.mulf %110, %111 : vector<16x512xbf16>
    %113 = vector.extract_strided_slice %50 {offsets = [6, 0], sizes = [1, 512], strides = [1, 1]} : vector<9x512xbf16> to vector<1x512xbf16>
    %114 = vector.broadcast %113 : vector<1x512xbf16> to vector<16x512xbf16>
    %115 = arith.mulf %112, %114 : vector<16x512xbf16>
    %116 = arith.extf %115 : vector<16x512xbf16> to vector<16x512xf32>
    %117 = arith.addf %107, %116 : vector<16x512xf32>
    %c496_i32 = arith.constant 496 : i32
    %118 = tpu.dynamic_rotate %48 by %c496_i32 dim 1 : vector<16x512xf32>, i32 -> vector<16x512xf32>
    %119 = vector.extract_strided_slice %49 {offsets = [0, 7], sizes = [16, 1], strides = [1, 1]} : vector<16x9xbf16> to vector<16x1xbf16>
    %120 = arith.truncf %118 : vector<16x512xf32> to vector<16x512xbf16>
    %121 = vector.broadcast %119 : vector<16x1xbf16> to vector<16x512xbf16>
    %122 = arith.mulf %120, %121 : vector<16x512xbf16>
    %123 = vector.extract_strided_slice %50 {offsets = [7, 0], sizes = [1, 512], strides = [1, 1]} : vector<9x512xbf16> to vector<1x512xbf16>
    %124 = vector.broadcast %123 : vector<1x512xbf16> to vector<16x512xbf16>
    %125 = arith.mulf %122, %124 : vector<16x512xbf16>
    %126 = arith.extf %125 : vector<16x512xbf16> to vector<16x512xf32>
    %127 = arith.addf %117, %126 : vector<16x512xf32>
    %c495_i32 = arith.constant 495 : i32
    %128 = tpu.dynamic_rotate %48 by %c495_i32 dim 1 : vector<16x512xf32>, i32 -> vector<16x512xf32>
    %129 = vector.extract_strided_slice %49 {offsets = [0, 8], sizes = [16, 1], strides = [1, 1]} : vector<16x9xbf16> to vector<16x1xbf16>
    %130 = arith.truncf %128 : vector<16x512xf32> to vector<16x512xbf16>
    %131 = vector.broadcast %129 : vector<16x1xbf16> to vector<16x512xbf16>
    %132 = arith.mulf %130, %131 : vector<16x512xbf16>
    %133 = vector.extract_strided_slice %50 {offsets = [8, 0], sizes = [1, 512], strides = [1, 1]} : vector<9x512xbf16> to vector<1x512xbf16>
    %134 = vector.broadcast %133 : vector<1x512xbf16> to vector<16x512xbf16>
    %135 = arith.mulf %132, %134 : vector<16x512xbf16>
    %136 = arith.extf %135 : vector<16x512xbf16> to vector<16x512xf32>
    %137 = arith.addf %127, %136 : vector<16x512xf32>
    %138 = vector.broadcast %5 : vector<16x1xf32> to vector<16x512xf32>
    %139 = arith.mulf %137, %138 : vector<16x512xf32>
    %140 = vector.broadcast %6 : vector<16x1xf32> to vector<16x512xf32>
    %141 = arith.addf %139, %140 : vector<16x512xf32>
    %cst_26 = arith.constant -1.000000e+00 : f32
    %cst_27 = arith.constant 1.000000e+00 : f32
    %142 = vector.broadcast %cst_26 : f32 to vector<16x512xf32>
    %143 = arith.maximumf %142, %141 : vector<16x512xf32>
    %144 = vector.broadcast %cst_27 : f32 to vector<16x512xf32>
    %145 = arith.minimumf %144, %143 : vector<16x512xf32>
    %c0_28 = arith.constant 0 : index
    %c0_29 = arith.constant 0 : index
    %146 = vector.load %arg5[%c0_28, %c0_29] : memref<16x2xbf16, #tpu.memory_space<vmem>>, vector<16x2xbf16>
    %c0_30 = arith.constant 0 : index
    %c0_31 = arith.constant 0 : index
    %147 = vector.load %arg6[%c0_30, %c0_31] : memref<16x2xbf16, #tpu.memory_space<vmem>>, vector<16x2xbf16>
    %148 = vector.extract_strided_slice %145 {offsets = [0, 0], sizes = [16, 256], strides = [1, 1]} : vector<16x512xf32> to vector<16x256xf32>
    %cst_32 = arith.constant dense<0.000000e+00> : vector<16xf32>
    %149 = vector.multi_reduction <add>, %148, %cst_32 [1] : vector<16x256xf32> to vector<16xf32>
    %150 = vector.shape_cast %149 : vector<16xf32> to vector<16x1xf32>
    %cst_33 = arith.constant 3.906250e-03 : f32
    %151 = vector.broadcast %cst_33 : f32 to vector<16x1xf32>
    %152 = arith.mulf %150, %151 : vector<16x1xf32>
    %153 = arith.mulf %152, %7 : vector<16x1xf32>
    %154 = arith.addf %153, %8 : vector<16x1xf32>
    %cst_34 = arith.constant -1.000000e+00 : f32
    %cst_35 = arith.constant 1.000000e+00 : f32
    %155 = vector.broadcast %cst_34 : f32 to vector<16x1xf32>
    %156 = arith.maximumf %155, %154 : vector<16x1xf32>
    %157 = vector.broadcast %cst_35 : f32 to vector<16x1xf32>
    %158 = arith.minimumf %157, %156 : vector<16x1xf32>
    %cst_36 = arith.constant 0.000000e+00 : f32
    %159 = vector.broadcast %cst_36 : f32 to vector<16x1xf32>
    %160 = arith.cmpf ogt, %158, %159 : vector<16x1xf32>
    %cst_37 = arith.constant 0.000000e+00 : f32
    %161 = vector.broadcast %cst_37 : f32 to vector<16x1xf32>
    %162 = arith.cmpf olt, %158, %161 : vector<16x1xf32>
    %cst_38 = arith.constant -1.000000e+00 : f32
    %cst_39 = arith.constant 0.000000e+00 : f32
    %163 = vector.broadcast %cst_38 : f32 to vector<16x1xf32>
    %164 = vector.broadcast %cst_39 : f32 to vector<16x1xf32>
    %165 = arith.select %162, %163, %164 : vector<16x1xi1>, vector<16x1xf32>
    %cst_40 = arith.constant 1.000000e+00 : f32
    %166 = vector.broadcast %cst_40 : f32 to vector<16x1xf32>
    %167 = arith.select %160, %166, %165 : vector<16x1xi1>, vector<16x1xf32>
    %168 = arith.truncf %167 : vector<16x1xf32> to vector<16x1xbf16>
    %169 = vector.broadcast %168 : vector<16x1xbf16> to vector<16x2xbf16>
    %170 = arith.mulf %169, %146 : vector<16x2xbf16>
    %171 = arith.extf %170 : vector<16x2xbf16> to vector<16x2xf32>
    %cst_41 = arith.constant dense<0.000000e+00> : vector<2xf32>
    %172 = vector.multi_reduction <add>, %171, %cst_41 [0] : vector<16x2xf32> to vector<2xf32>
    %173 = vector.shape_cast %172 : vector<2xf32> to vector<1x2xf32>
    %174 = arith.truncf %173 : vector<1x2xf32> to vector<1x2xbf16>
    %175 = arith.extf %174 : vector<1x2xbf16> to vector<1x2xf32>
    %176 = arith.addf %175, %12 : vector<1x2xf32>
    %177 = arith.mulf %176, %13 : vector<1x2xf32>
    %178 = arith.addf %177, %14 : vector<1x2xf32>
    %cst_42 = arith.constant -1.000000e+00 : f32
    %cst_43 = arith.constant 1.000000e+00 : f32
    %179 = vector.broadcast %cst_42 : f32 to vector<1x2xf32>
    %180 = arith.maximumf %179, %178 : vector<1x2xf32>
    %181 = vector.broadcast %cst_43 : f32 to vector<1x2xf32>
    %182 = arith.minimumf %181, %180 : vector<1x2xf32>
    %cst_44 = arith.constant 0.000000e+00 : f32
    %183 = vector.broadcast %cst_44 : f32 to vector<1x2xf32>
    %184 = arith.cmpf ogt, %182, %183 : vector<1x2xf32>
    %cst_45 = arith.constant 0.000000e+00 : f32
    %185 = vector.broadcast %cst_45 : f32 to vector<1x2xf32>
    %186 = arith.cmpf olt, %182, %185 : vector<1x2xf32>
    %cst_46 = arith.constant -1.000000e+00 : f32
    %cst_47 = arith.constant 0.000000e+00 : f32
    %187 = vector.broadcast %cst_46 : f32 to vector<1x2xf32>
    %188 = vector.broadcast %cst_47 : f32 to vector<1x2xf32>
    %189 = arith.select %186, %187, %188 : vector<1x2xi1>, vector<1x2xf32>
    %cst_48 = arith.constant 1.000000e+00 : f32
    %190 = vector.broadcast %cst_48 : f32 to vector<1x2xf32>
    %191 = arith.select %184, %190, %189 : vector<1x2xi1>, vector<1x2xf32>
    %192 = arith.truncf %191 : vector<1x2xf32> to vector<1x2xbf16>
    %193 = vector.broadcast %192 : vector<1x2xbf16> to vector<16x2xbf16>
    %194 = arith.mulf %193, %147 : vector<16x2xbf16>
    %195 = arith.extf %194 : vector<16x2xbf16> to vector<16x2xf32>
    %cst_49 = arith.constant dense<0.000000e+00> : vector<16xf32>
    %196 = vector.multi_reduction <add>, %195, %cst_49 [1] : vector<16x2xf32> to vector<16xf32>
    %197 = vector.shape_cast %196 : vector<16xf32> to vector<16x1xf32>
    %198 = arith.truncf %197 : vector<16x1xf32> to vector<16x1xbf16>
    %199 = arith.extf %198 : vector<16x1xbf16> to vector<16x1xf32>
    %200 = arith.addf %199, %9 : vector<16x1xf32>
    %201 = arith.mulf %200, %10 : vector<16x1xf32>
    %202 = arith.addf %201, %11 : vector<16x1xf32>
    %203 = arith.negf %202 : vector<16x1xf32>
    %204 = math.exp %203 : vector<16x1xf32>
    %cst_50 = arith.constant 1.000000e+00 : f32
    %205 = vector.broadcast %cst_50 : f32 to vector<16x1xf32>
    %206 = arith.addf %205, %204 : vector<16x1xf32>
    %207 = arith.divf %205, %206 : vector<16x1xf32>
    %208 = vector.broadcast %207 : vector<16x1xf32> to vector<16x256xf32>
    %209 = arith.mulf %148, %208 : vector<16x256xf32>
    %210 = vector.extract_strided_slice %145 {offsets = [0, 256], sizes = [16, 256], strides = [1, 1]} : vector<16x512xf32> to vector<16x256xf32>
    %cst_51 = arith.constant dense<0.000000e+00> : vector<16xf32>
    %211 = vector.multi_reduction <add>, %210, %cst_51 [1] : vector<16x256xf32> to vector<16xf32>
    %212 = vector.shape_cast %211 : vector<16xf32> to vector<16x1xf32>
    %cst_52 = arith.constant 3.906250e-03 : f32
    %213 = vector.broadcast %cst_52 : f32 to vector<16x1xf32>
    %214 = arith.mulf %212, %213 : vector<16x1xf32>
    %215 = arith.mulf %214, %7 : vector<16x1xf32>
    %216 = arith.addf %215, %8 : vector<16x1xf32>
    %cst_53 = arith.constant -1.000000e+00 : f32
    %cst_54 = arith.constant 1.000000e+00 : f32
    %217 = vector.broadcast %cst_53 : f32 to vector<16x1xf32>
    %218 = arith.maximumf %217, %216 : vector<16x1xf32>
    %219 = vector.broadcast %cst_54 : f32 to vector<16x1xf32>
    %220 = arith.minimumf %219, %218 : vector<16x1xf32>
    %cst_55 = arith.constant 0.000000e+00 : f32
    %221 = vector.broadcast %cst_55 : f32 to vector<16x1xf32>
    %222 = arith.cmpf ogt, %220, %221 : vector<16x1xf32>
    %cst_56 = arith.constant 0.000000e+00 : f32
    %223 = vector.broadcast %cst_56 : f32 to vector<16x1xf32>
    %224 = arith.cmpf olt, %220, %223 : vector<16x1xf32>
    %cst_57 = arith.constant -1.000000e+00 : f32
    %cst_58 = arith.constant 0.000000e+00 : f32
    %225 = vector.broadcast %cst_57 : f32 to vector<16x1xf32>
    %226 = vector.broadcast %cst_58 : f32 to vector<16x1xf32>
    %227 = arith.select %224, %225, %226 : vector<16x1xi1>, vector<16x1xf32>
    %cst_59 = arith.constant 1.000000e+00 : f32
    %228 = vector.broadcast %cst_59 : f32 to vector<16x1xf32>
    %229 = arith.select %222, %228, %227 : vector<16x1xi1>, vector<16x1xf32>
    %230 = arith.truncf %229 : vector<16x1xf32> to vector<16x1xbf16>
    %231 = vector.broadcast %230 : vector<16x1xbf16> to vector<16x2xbf16>
    %232 = arith.mulf %231, %146 : vector<16x2xbf16>
    %233 = arith.extf %232 : vector<16x2xbf16> to vector<16x2xf32>
    %cst_60 = arith.constant dense<0.000000e+00> : vector<2xf32>
    %234 = vector.multi_reduction <add>, %233, %cst_60 [0] : vector<16x2xf32> to vector<2xf32>
    %235 = vector.shape_cast %234 : vector<2xf32> to vector<1x2xf32>
    %236 = arith.truncf %235 : vector<1x2xf32> to vector<1x2xbf16>
    %237 = arith.extf %236 : vector<1x2xbf16> to vector<1x2xf32>
    %238 = arith.addf %237, %12 : vector<1x2xf32>
    %239 = arith.mulf %238, %13 : vector<1x2xf32>
    %240 = arith.addf %239, %14 : vector<1x2xf32>
    %cst_61 = arith.constant -1.000000e+00 : f32
    %cst_62 = arith.constant 1.000000e+00 : f32
    %241 = vector.broadcast %cst_61 : f32 to vector<1x2xf32>
    %242 = arith.maximumf %241, %240 : vector<1x2xf32>
    %243 = vector.broadcast %cst_62 : f32 to vector<1x2xf32>
    %244 = arith.minimumf %243, %242 : vector<1x2xf32>
    %cst_63 = arith.constant 0.000000e+00 : f32
    %245 = vector.broadcast %cst_63 : f32 to vector<1x2xf32>
    %246 = arith.cmpf ogt, %244, %245 : vector<1x2xf32>
    %cst_64 = arith.constant 0.000000e+00 : f32
    %247 = vector.broadcast %cst_64 : f32 to vector<1x2xf32>
    %248 = arith.cmpf olt, %244, %247 : vector<1x2xf32>
    %cst_65 = arith.constant -1.000000e+00 : f32
    %cst_66 = arith.constant 0.000000e+00 : f32
    %249 = vector.broadcast %cst_65 : f32 to vector<1x2xf32>
    %250 = vector.broadcast %cst_66 : f32 to vector<1x2xf32>
    %251 = arith.select %248, %249, %250 : vector<1x2xi1>, vector<1x2xf32>
    %cst_67 = arith.constant 1.000000e+00 : f32
    %252 = vector.broadcast %cst_67 : f32 to vector<1x2xf32>
    %253 = arith.select %246, %252, %251 : vector<1x2xi1>, vector<1x2xf32>
    %254 = arith.truncf %253 : vector<1x2xf32> to vector<1x2xbf16>
    %255 = vector.broadcast %254 : vector<1x2xbf16> to vector<16x2xbf16>
    %256 = arith.mulf %255, %147 : vector<16x2xbf16>
    %257 = arith.extf %256 : vector<16x2xbf16> to vector<16x2xf32>
    %cst_68 = arith.constant dense<0.000000e+00> : vector<16xf32>
    %258 = vector.multi_reduction <add>, %257, %cst_68 [1] : vector<16x2xf32> to vector<16xf32>
    %259 = vector.shape_cast %258 : vector<16xf32> to vector<16x1xf32>
    %260 = arith.truncf %259 : vector<16x1xf32> to vector<16x1xbf16>
    %261 = arith.extf %260 : vector<16x1xbf16> to vector<16x1xf32>
    %262 = arith.addf %261, %9 : vector<16x1xf32>
    %263 = arith.mulf %262, %10 : vector<16x1xf32>
    %264 = arith.addf %263, %11 : vector<16x1xf32>
    %265 = arith.negf %264 : vector<16x1xf32>
    %266 = math.exp %265 : vector<16x1xf32>
    %cst_69 = arith.constant 1.000000e+00 : f32
    %267 = vector.broadcast %cst_69 : f32 to vector<16x1xf32>
    %268 = arith.addf %267, %266 : vector<16x1xf32>
    %269 = arith.divf %267, %268 : vector<16x1xf32>
    %270 = vector.broadcast %269 : vector<16x1xf32> to vector<16x256xf32>
    %271 = arith.mulf %210, %270 : vector<16x256xf32>
    %272 = tpu.concatenate %209, %271 in 1 : vector<16x256xf32>, vector<16x256xf32> -> vector<16x512xf32>
    %cst_70 = arith.constant 0.000000e+00 : f32
    %273 = vector.broadcast %cst_70 : f32 to vector<16x512xf32>
    %274 = arith.cmpf ogt, %272, %273 : vector<16x512xf32>
    %cst_71 = arith.constant 0.000000e+00 : f32
    %275 = vector.broadcast %cst_71 : f32 to vector<16x512xf32>
    %276 = arith.cmpf olt, %272, %275 : vector<16x512xf32>
    %cst_72 = arith.constant -1.000000e+00 : f32
    %cst_73 = arith.constant 0.000000e+00 : f32
    %277 = vector.broadcast %cst_72 : f32 to vector<16x512xf32>
    %278 = vector.broadcast %cst_73 : f32 to vector<16x512xf32>
    %279 = arith.select %276, %277, %278 : vector<16x512xi1>, vector<16x512xf32>
    %cst_74 = arith.constant 1.000000e+00 : f32
    %280 = vector.broadcast %cst_74 : f32 to vector<16x512xf32>
    %281 = arith.select %274, %280, %279 : vector<16x512xi1>, vector<16x512xf32>
    %282 = arith.truncf %281 : vector<16x512xf32> to vector<16x512xbf16>
    %c0_75 = arith.constant 0 : index
    %c0_76 = arith.constant 0 : index
    %283 = vector.load %arg7[%c0_75, %c0_76] : memref<8x16xbf16, #tpu.memory_space<vmem>>, vector<8x16xbf16>
    %cst_77 = arith.constant dense<0.000000e+00> : vector<8x512xf32>
    %284 = tpu.matmul %283, %282, %cst_77 {dimension_numbers = #tpu.dot_dimension_numbers<[1], [0], [0], [1], [0, 0, 1, 1], [], []>} : vector<8x16xbf16>, vector<16x512xbf16>, vector<8x512xf32> -> vector<8x512xf32>
    %285 = vector.broadcast %15 : vector<8x1xf32> to vector<8x512xf32>
    %286 = arith.mulf %284, %285 : vector<8x512xf32>
    %287 = vector.broadcast %16 : vector<8x1xf32> to vector<8x512xf32>
    %288 = arith.addf %286, %287 : vector<8x512xf32>
    %289 = arith.addf %288, %19 : vector<8x512xf32>
    %290 = vector.broadcast %17 : vector<8x1xf32> to vector<8x512xf32>
    %291 = arith.mulf %289, %290 : vector<8x512xf32>
    %292 = vector.broadcast %18 : vector<8x1xf32> to vector<8x512xf32>
    %293 = arith.addf %291, %292 : vector<8x512xf32>
    %cst_78 = arith.constant -1.000000e+00 : f32
    %cst_79 = arith.constant 1.000000e+00 : f32
    %294 = vector.broadcast %cst_78 : f32 to vector<8x512xf32>
    %295 = arith.maximumf %294, %293 : vector<8x512xf32>
    %296 = vector.broadcast %cst_79 : f32 to vector<8x512xf32>
    %297 = arith.minimumf %296, %295 : vector<8x512xf32>
    %c0_80 = arith.constant 0 : index
    %c0_81 = arith.constant 0 : index
    %298 = vector.load %arg11[%c0_80, %c0_81] : memref<8x512xf32, #tpu.memory_space<vmem>>, vector<8x512xf32>
    tpu.vector_store %arg11[%c0_80, %c0_81], %297 {strides = array<i32>} : memref<8x512xf32, #tpu.memory_space<vmem>>, vector<8x512xf32>,
    return
  }
  func.func @transform_0(%arg0: i32) -> (i32, i32) {
    %c0_i32 = arith.constant 0 : i32
    %c0_i32_0 = arith.constant 0 : i32
    return %c0_i32, %arg0 : i32, i32
  }
  func.func @transform_1(%arg0: i32) -> (i32, i32) {
    %c0_i32 = arith.constant 0 : i32
    %c0_i32_0 = arith.constant 0 : i32
    %c0_i32_1 = arith.constant 0 : i32
    return %c0_i32, %c0_i32_0 : i32, i32
  }
  func.func @transform_2(%arg0: i32) -> (i32, i32) {
    %c0_i32 = arith.constant 0 : i32
    %c0_i32_0 = arith.constant 0 : i32
    %c0_i32_1 = arith.constant 0 : i32
    return %c0_i32, %c0_i32_0 : i32, i32
  }
  func.func @transform_3(%arg0: i32) -> (i32, i32) {
    %c0_i32 = arith.constant 0 : i32
    %c0_i32_0 = arith.constant 0 : i32
    %c0_i32_1 = arith.constant 0 : i32
    return %c0_i32, %c0_i32_0 : i32, i32
  }
  func.func @transform_4(%arg0: i32) -> (i32, i32) {
    %c0_i32 = arith.constant 0 : i32
    %c0_i32_0 = arith.constant 0 : i32
    %c0_i32_1 = arith.constant 0 : i32
    return %c0_i32, %c0_i32_0 : i32, i32
  }
  func.func @transform_5(%arg0: i32) -> (i32, i32) {
    %c0_i32 = arith.constant 0 : i32
    %c0_i32_0 = arith.constant 0 : i32
    %c0_i32_1 = arith.constant 0 : i32
    return %c0_i32, %c0_i32_0 : i32, i32
  }
  func.func @transform_6(%arg0: i32) -> (i32, i32) {
    %c0_i32 = arith.constant 0 : i32
    %c0_i32_0 = arith.constant 0 : i32
    %c0_i32_1 = arith.constant 0 : i32
    return %c0_i32, %c0_i32_0 : i32, i32
  }
  func.func @transform_7(%arg0: i32) -> (i32, i32) {
    %c0_i32 = arith.constant 0 : i32
    %c0_i32_0 = arith.constant 0 : i32
    %c0_i32_1 = arith.constant 0 : i32
    return %c0_i32, %c0_i32_0 : i32, i32
  }
  func.func @transform_8(%arg0: i32) -> (i32, i32) {
    %c0_i32 = arith.constant 0 : i32
    %c0_i32_0 = arith.constant 0 : i32
    %c0_i32_1 = arith.constant 0 : i32
    return %c0_i32, %c0_i32_0 : i32, i32
  }
  func.func @transform_9(%arg0: i32) -> (i32, i32) {
    %c0_i32 = arith.constant 0 : i32
    %c0_i32_0 = arith.constant 0 : i32
    %c0_i32_1 = arith.constant 0 : i32
    return %c0_i32, %c0_i32_0 : i32, i32
  }
  func.func @transform_10(%arg0: i32) -> (i32, i32) {
    %c0_i32 = arith.constant 0 : i32
    %c0_i32_0 = arith.constant 0 : i32
    return %c0_i32, %arg0 : i32, i32
  }
}

</mosaic_0001>

<bundles_post_ra>
// kernel: tpu_custom_call.1
= control target key start
LH: loop header
LB: loop body
LE: loop exit
PB: predicated region body
PF: predicated region fallthrough
CT: control target
= control target key end

     0   :  { %15 = vsyncpa [#allocation3], 0  ;;  %s3127_s0 = inlined_call_operand.vmem [shape: f32[8,512], index: 0, kind: input, shape index: {}]   ;;  %s3128_s1 = inlined_call_operand.vmem [shape: bf16[16,8], index: 1, kind: input, shape index: {}]   ;;  %s3129_s2 = inlined_call_operand.hbm [shape: bf16[16,9], index: 2, kind: input, shape index: {}]   ;;  %s3130_s3 = inlined_call_operand.hbm [shape: bf16[9,512], index: 3, kind: input, shape index: {}]   ;;  %s3131_s4 = inlined_call_operand.vmem [shape: bf16[16,2], index: 4, kind: input, shape index: {}]   ;;  %s3132_s5 = inlined_call_operand.vmem [shape: bf16[16,2], index: 5, kind: input, shape index: {}]   ;;  %s3133_s6 = inlined_call_operand.vmem [shape: bf16[8,16], index: 6, kind: input, shape index: {}]   ;;  %s3134_s7 = inlined_call_operand.vmem [shape: f32[16,9], index: 7, kind: input, shape index: {}]   ;;  %s3135_s8 = inlined_call_operand.vmem [shape: f32[3,2], index: 8, kind: input, shape index: {}]   ;;  %s3136_s9 = inlined_call_operand.vmem [shape: f32[8,4], index: 9, kind: input, shape index: {}]   ;;  %s3137_s10 = inlined_call_operand.hbm [shape: f32[8,512], index: 10, kind: output, shape index: {}]  }
   0x1   :  { %16 = vsyncpa [#allocation6], 0 }
   0x2   :  { %17 = vsyncpa [#allocation4], 0  ;;  %s2034_s13 = smov [#allocation2]   ;;  %s1962_s17 = scalar_lea.hbm %s3129_s2, 128 }
   0x3   :  { %s27_s14 = sshll.u32 %s2034_s13, 4  ;;  %p1963_p0 = scmp.ne.s32.totalorder %s3129_s2, %s1962_s17  ;;  %s28_s14 = int_to_ptr.vmem [resolvable:$true] %s27_s14 }
   0x4   :  { %p1966_p1 = scmp.lt.u32.totalorder %s1962_s17, %s3129_s2 }
   0x6   :  { %p1968_p2 = pnand %p1966_p1, %p1963_p0 }
   0x8   :  { %1971 = shalt.err (!%p1968_p2)
}
   0x9   :  { %s1972_s22 = scalar_lea.vmem %s28_s14, 128  ;;  %p1977_p4 = scmp.lt.s32.totalorder %s28_s14, %s28_s14 }
   0xa   :  { %p1973_p3 = scmp.ne.s32.totalorder %s28_s14, %s1972_s22  ;;  %p1978_p5 = scmp.lt.s32.totalorder %s1972_s22, %s1972_s22 }
   0xc   :  { %p1979_p6 = por %p1978_p5, %p1977_p4 }
   0xe   :  { %p1980_p7 = pnand %p1979_p6, %p1973_p3 }
  0x10   :  { %1983 = shalt.err (!%p1980_p7)
}
  0x11   :  { %s2035_s23 = smov 64   ;;  %s2036_s24 = smov 4  }
  0x12   :  { %33 = dma.hbm_to_vmem [thread:$0]  %s3129_s2, 128, %s28_s14, [#allocation3], %s2035_s23, %s2035_s23, %s2036_s24  }
  0x13   :  { %s2037_s27 = smov [#allocation5]   ;;  %s1984_s11 = scalar_lea.hbm %s3130_s3, 512 }
  0x14   :  { %s39_s28 = sshll.u32 %s2037_s27, 4  ;;  %p1985_p8 = scmp.ne.s32.totalorder %s3130_s3, %s1984_s11  ;;  %s40_s28 = int_to_ptr.vmem [resolvable:$true] %s39_s28 }
  0x15   :  { %p1988_p9 = scmp.lt.u32.totalorder %s1984_s11, %s3130_s3 }
  0x17   :  { %p1990_p10 = pnand %p1988_p9, %p1985_p8 }
  0x19   :  { %1993 = shalt.err (!%p1990_p10)
}
  0x1a   :  { %s1994_s17 = scalar_lea.vmem %s40_s28, 512  ;;  %p1999_p12 = scmp.lt.s32.totalorder %s40_s28, %s40_s28 }
  0x1b   :  { %p1995_p11 = scmp.ne.s32.totalorder %s40_s28, %s1994_s17  ;;  %p2000_p13 = scmp.lt.s32.totalorder %s1994_s17, %s1994_s17 }
  0x1d   :  { %p2001_p0 = por %p2000_p13, %p1999_p12 }
  0x1f   :  { %p2002_p1 = pnand %p2001_p0, %p1995_p11 }
  0x21   :  { %2005 = shalt.err (!%p2002_p1)
}
  0x22   :  { %s2038_s2 = smov 256   ;;  %s2039_s14 = smov 16  }
  0x23   :  { %45 = dma.hbm_to_vmem [thread:$0]  %s3130_s3, 512, %s40_s28, [#allocation6], %s2038_s2, %s2038_s2, %s2039_s14  }
  0x24   :  { %2028 = dma.done.wait [#allocation3], 128  }
  0x25   :  { %2029 = vsyncadd [#allocation3], 4294967168 }
  0x26   :  { %2030 = dma.done.wait [#allocation6], 512  }
  0x27   :  { %2031 = vsyncadd [#allocation6], 4294966784  ;;  %v3141_v0 = vmov 0   ;;  %v3142_v1 = vmov 1   ;;  %v70_v2 = vld [vmem:[%s3127_s0 + $0x8] sm:$0xff]  ;;  %vm104_vm0 = vcmask 1043456   ;;  %v307_v33 = vlaneseq }
  0x28   :  { %149 = vmatprep.mubr.bf16.mxu0 %v3141_v0  ;;  %192 = vmatprep.mubr.bf16.mxu1 %v3141_v0  ;;  %v72_v3 = vld [vmem:[%s3127_s0 + $0x18] sm:$0xff]  ;;  %v69_v4 = vld [vmem:[%s3127_s0] sm:$0xff]  ;;  %vm74_vm1 = vcmp.gt.f32.partialorder %v70_v2, 0.0  ;;  %vm78_vm2 = vcmp.lt.f32.partialorder %v70_v2, 0.0  ;;  %v71_v5 = vld [vmem:[%s3127_s0 + $0x10] sm:$0xff]  ;;  %v3144_v6 = vmov 0.0  }
  0x29   :  { %1742 = vset.pattern.permute.xlu1 %v3142_v1  ;;  %1741 = vset.pattern.permute.xlu0 %v3141_v0  ;;  %vm76_vm3 = vcmp.gt.f32.partialorder %v72_v3, 0.0  ;;  %vm80_vm4 = vcmp.lt.f32.partialorder %v72_v3, 0.0  ;;  %v82_v7 = vsel %vm78_vm2, -1.0, %v3144_v6  ;;  %vm73_vm5 = vcmp.gt.f32.partialorder %v69_v4, 0.0  ;;  %v2162_v15 = vld [vmem:[%s3134_s7] sm:$0xff]  ;;  %v2172_v19 = vld [vmem:[%s3134_s7 + $0x8] sm:$0xff] }
  0x2a   :  { %v84_v8 = vsel %vm80_vm4, -1.0, %v3144_v6  ;;  %vm77_vm6 = vcmp.lt.f32.partialorder %v69_v4, 0.0  ;;  %v86_v9 = vsel %vm74_vm1, 1.0, %v82_v7  ;;  %vm75_vm7 = vcmp.gt.f32.partialorder %v71_v5, 0.0  ;;  %222 = vperm.xlu1 %1742, %v2162_v15   ;;  %205 = vperm.xlu0 %1741, %v2162_v15   ;;  %v1929_v22 = vld [vmem:[%s3128_s1] sm:$0xff]   ;;  %s2051_s1 = smov 15  }
  0x2b   :  { %v88_v10 = vsel %vm76_vm3, 1.0, %v84_v8  ;;  %v81_v11 = vsel %vm77_vm6, -1.0, %v3144_v6  ;;  %v90_v12 = vpack.c.bf16 %v86_v9, %v86_v9  ;;  %vm79_vm8 = vcmp.lt.f32.partialorder %v71_v5, 0.0  ;;  %v286_v24 = vld [vmem:[#allocation2 + $0x4] sm:$0xf]  ;;  %s2052_s13 = smov 17  }
  0x2c   :  { %v92_v13 = vpack.c.bf16 %v88_v10, %v88_v10  ;;  %v85_v14 = vsel %vm73_vm5, 1.0, %v81_v11  ;;  %v83_v17 = vsel %vm79_vm8, -1.0, %v3144_v6  ;;  %vm100_vm9 = vcmask 64512   ;;  %v285_v25 = vld [vmem:[#allocation2] sm:$0xf]  ;;  %s2053_s15 = smov 1  }
  0x2d   :  { %v89_v16 = vpack.c.bf16 %v85_v14, %v85_v14  ;;  %1660 = vmatprep.subr.msk.bf16.mxu0 %vm104_vm0, %v90_v12  ;;  %v87_v18 = vsel %vm75_vm7, 1.0, %v83_v17  ;;  %v3140_v26 = vmov 2   ;;  %v2044_v27 = vmov 4   ;;  %s2054_s16 = smov 127   ;;  %s2055_s17 = smov 113  }
  0x2e   :  { %1662 = vmatprep.subr.msk.bf16.mxu1 %vm104_vm0, %v92_v13  ;;  %v91_v21 = vpack.c.bf16 %v87_v18, %v87_v18  ;;  %226 = vperm.xlu1 %1742, %v2172_v19   ;;  %v3138_v28 = vmov 3   ;;  %v2046_v29 = vmov 5   ;;  %v3143_v30 = vmov 6   ;;  %s2056_s2 = smov 112   ;;  %s2057_s18 = smov 111  }
  0x2f   :  { %v106_v20 = vsel %vm104_vm0, %v89_v16, 0  ;;  %210 = vperm.xlu0 %1741, %v2172_v19   ;;  %v2048_v31 = vmov 7   ;;  %v2049_v32 = vmov 8   ;;  %v2050_v34 = vmov 839922192  }
  0x30   :  { %118 = vmatpush1.bf16.msra.mxu0 %v106_v20  ;;  %v112_v23 = vsel %vm104_vm0, %v91_v21, 0  ;;  %v328_v35 = vunpack.c.l.s4 %v2050_v34  ;;  %v2197_v39 = vshrl.u32 %v307_v33, 7 }
  0x31   :  { %161 = vmatpush1.bf16.msra.mxu1 %v112_v23 }
  0x32   :  { %1743 = vset.pattern.permute.xlu1 %v3141_v0  ;;  %v329_v38 = vunpack.c.0.s8 %v328_v35 }
  0x33   :  { %1661 = vmatmul.mubr.msk.bf16.vlgmr.msra.gmra.mrb[0].mxu0 %vm100_vm9, %v1929_v22  ;;  %336 = vperm.xlu1 %1743, %v286_v24  }
  0x34   :  { %1544 = vmatprep.mubr.bf16.mxu0 %v3141_v0  ;;  %1663 = vmatmul.mubr.msk.bf16.vlgmr.msra.gmra.mrb[0].mxu1 %vm100_vm9, %v1929_v22  ;;  %v2204_v42 = vsub.s32 %v329_v38, %v2197_v39 }
  0x35   :  { %324 = vperm.xlu0 %1741, %v285_v25   ;;  %1585 = vmatprep.mubr.bf16.mxu1 %v3141_v0 }
  0x37   :  { %1745 = vset.pattern.permute.xlu1 %v3142_v1 }
  0x38   :  { %455 = vperm.xlu1 %1745, %v286_v24  }
  0x39   :  { %1744 = vset.pattern.permute.xlu0 %v3142_v1 }
  0x3a   :  { %444 = vperm.xlu0 %1744, %v285_v25  }
  0x3c   :  { %1746 = vset.pattern.permute.xlu1 %v3140_v26 }
  0x3d   :  { %553 = vperm.xlu1 %1746, %v285_v25  }
  0x3e   :  { %1748 = vset.pattern.permute.xlu0 %v2044_v27 }
  0x3f   :  { %722 = vperm.xlu0 %1748, %v285_v25  }
  0x41   :  { %1747 = vset.pattern.permute.xlu1 %v3138_v28 }
  0x42   :  { %650 = vperm.xlu1 %1747, %v285_v25  }
  0x43   :  { %1751 = vset.pattern.permute.xlu0 %v2046_v29 }
  0x44   :  { %810 = vperm.xlu0 %1751, %v286_v24  }
  0x46   :  { %661 = vperm.xlu1 %1747, %v286_v24  }
  0x48   :  { %1752 = vset.pattern.permute.xlu0 %v3143_v30 }
  0x49   :  { %896 = vperm.xlu0 %1752, %v285_v25  }
  0x4a   :  { %1749 = vset.pattern.permute.xlu1 %v2044_v27 }
  0x4b   :  { %733 = vperm.xlu1 %1749, %v286_v24  }
  0x4d   :  { %1755 = vset.pattern.permute.xlu0 %v2048_v31 }
  0x4e   :  { %1004 = vperm.xlu0 %1755, %v286_v24  }
  0x4f   :  { %1750 = vset.pattern.permute.xlu1 %v2046_v29 }
  0x50   :  { %799 = vperm.xlu1 %1750, %v285_v25  }
  0x52   :  { %1756 = vset.pattern.permute.xlu0 %v3140_v26 }
  0x53   :  { %564 = vperm.xlu0 %1756, %v286_v24  }
  0x54   :  { %1753 = vset.pattern.permute.xlu1 %v3143_v30 }
  0x55   :  { %907 = vperm.xlu1 %1753, %v286_v24  }
  0x59   :  { %1754 = vset.pattern.permute.xlu1 %v2048_v31 }
  0x5a   :  { %993 = vperm.xlu1 %1754, %v285_v25  }
  0x5e   :  { %1757 = vset.pattern.permute.xlu1 %v2049_v32 }
  0x5f   :  { %1090 = vperm.xlu1 %1757, %v285_v25  }
  0x63   :  { %1101 = vperm.xlu1 %1757, %v286_v24  }
  0x67   :  { %1918 = vset.pattern.permute.xlu1 %v3140_v26 }
  0xa9   :  { %v2194_v36 = vpop.permute.xlu1 %222  ;;  %v206_v37 = vpop.permute.xlu0 %205 }
  0xad   :  { %v2199_v40 = vpop.permute.xlu1 %226 }
  0xae   :  { %v2201_v41 = vpop.permute.xlu0 %210 }
  0xb2   :  { %v337_v43 = vpop.permute.xlu1 %336 }
  0xb3   :  { %v345_v45 = vrot.slane %v337_v43, %v2204_v42 }
  0xb4   :  { %v325_v44 = vpop.permute.xlu0 %324 }
  0xb5   :  { %v333_v46 = vrot.slane %v325_v44, %v2204_v42 }
  0xb7   :  { %v2208_v47 = vcombine.low %v333_v46, %v345_v45  ;;  %v456_v48 = vpop.permute.xlu1 %455 }
  0xb8   :  { %v464_v50 = vrot.slane %v456_v48, %v2204_v42 }
  0xb9   :  { %v445_v49 = vpop.permute.xlu0 %444 }
  0xba   :  { %v453_v51 = vrot.slane %v445_v49, %v2204_v42 }
  0xbc   :  { %v2212_v52 = vcombine.low %v453_v51, %v464_v50  ;;  %v2214_v53 = vpop.permute.xlu1 %553 }
  0xbe   :  { %v723_v58 = vpop.permute.xlu0 %722 }
  0xbf   :  { %v731_v60 = vrot.slane %v723_v58, %v2204_v42 }
  0xc1   :  { %v651_v54 = vpop.permute.xlu1 %650 }
  0xc2   :  { %v659_v55 = vrot.slane %v651_v54, %v2204_v42 }
  0xc3   :  { %v811_v2 = vpop.permute.xlu0 %810 }
  0xc4   :  { %v819_v3 = vrot.slane %v811_v2, %v2204_v42 }
  0xc5   :  { %v662_v56 = vpop.permute.xlu1 %661 }
  0xc6   :  { %v670_v57 = vrot.slane %v662_v56, %v2204_v42 }
  0xc8   :  { %v2218_v59 = vcombine.low %v659_v55, %v670_v57  ;;  %v897_v4 = vpop.permute.xlu0 %896 }
  0xc9   :  { %v905_v8 = vrot.slane %v897_v4, %v2204_v42 }
  0xca   :  { %v734_v61 = vpop.permute.xlu1 %733 }
  0xcb   :  { %v742_v62 = vrot.slane %v734_v61, %v2204_v42 }
  0xcd   :  { %v2222_v63 = vcombine.low %v731_v60, %v742_v62  ;;  %v1005_v12 = vpop.permute.xlu0 %1004 }
  0xce   :  { %v1013_v13 = vrot.slane %v1005_v12, %v2204_v42 }
  0xcf   :  { %v800_v5 = vpop.permute.xlu1 %799 }
  0xd0   :  { %v808_v7 = vrot.slane %v800_v5, %v2204_v42 }
  0xd2   :  { %v2227_v9 = vcombine.low %v808_v7, %v819_v3 }
  0xd4   :  { %v908_v10 = vpop.permute.xlu1 %907 }
  0xd5   :  { %v916_v11 = vrot.slane %v908_v10, %v2204_v42 }
  0xd7   :  { %v2231_v14 = vcombine.low %v905_v8, %v916_v11 }
  0xd9   :  { %v994_v16 = vpop.permute.xlu1 %993 }
  0xda   :  { %v1002_v17 = vrot.slane %v994_v16, %v2204_v42 }
  0xdc   :  { %v2234_v18 = vcombine.low %v1002_v17, %v1013_v13 }
  0xde   :  { %v1091_v20 = vpop.permute.xlu1 %1090 }
  0xdf   :  { %v1099_v21 = vrot.slane %v1091_v20, %v2204_v42 }
  0xe2   :  { %v1102_v22 = vpop.permute.xlu1 %1101 }
  0xe3   :  { %v1110_v23 = vrot.slane %v1102_v22, %v2204_v42 }
  0xe5   :  { %v2238_v24 = vcombine.low %v1099_v21, %v1110_v23 }
 0x106   :  { %v151_v25 = vpop.f32.mrb[0].mxu0 }
 0x107   :  { %v213_v29 = vmul.f32 %v206_v37, %v151_v25  ;;  %v153_v31 = vpop.f32.mrb[1].mxu0  ;;  %v194_v32 = vpop.f32.mrb[0].mxu1 }
 0x108   :  { %v214_v34 = vmul.f32 %v206_v37, %v153_v31  ;;  %v155_v35 = vpop.f32.mrb[2].mxu0  ;;  %v215_v43 = vmul.f32 %v206_v37, %v194_v32  ;;  %v196_v44 = vpop.f32.mrb[1].mxu1 }
 0x109   :  { %v229_v38 = vadd.f32 %v2194_v36, %v213_v29  ;;  %v217_v45 = vmul.f32 %v2201_v41, %v155_v35  ;;  %v157_v46 = vpop.f32.mrb[3].mxu0  ;;  %v216_v49 = vmul.f32 %v206_v37, %v196_v44  ;;  %v198_v50 = vpop.f32.mrb[2].mxu1 }
 0x10a   :  { %v230_v48 = vadd.f32 %v2194_v36, %v214_v34  ;;  %v218_v51 = vmul.f32 %v2201_v41, %v157_v46  ;;  %v231_v55 = vadd.f32 %v2194_v36, %v215_v43  ;;  %v200_v57 = vpop.f32.mrb[3].mxu1  ;;  %v219_v61 = vmul.f32 %v2201_v41, %v198_v50 }
 0x10b   :  { %v1664_v54 = vclamps-f32 %v229_v38, 1.0  ;;  %v233_v56 = vadd.f32 %v2199_v40, %v217_v45  ;;  %v232_v60 = vadd.f32 %v2194_v36, %v216_v49  ;;  %v220_v7 = vmul.f32 %v2201_v41, %v200_v57 }
 0x10c   :  { %v1665_v58 = vclamps-f32 %v230_v48, 1.0  ;;  %v1666_v62 = vclamps-f32 %v231_v55, 1.0  ;;  %v234_v4 = vadd.f32 %v2199_v40, %v218_v51  ;;  %v235_v13 = vadd.f32 %v2199_v40, %v219_v61 }
 0x10d   :  { %vm253_vm10 = vcmp.gt.f32.partialorder %v1664_v54, 0.0  ;;  %vm261_vm11 = vcmp.lt.f32.partialorder %v1664_v54, 0.0  ;;  %v1668_v2 = vclamps-f32 %v233_v56, 1.0  ;;  %v1667_v3 = vclamps-f32 %v232_v60, 1.0  ;;  %v288_v60 = vld [vmem:[#allocation5 + $0x8] sm:$0xff] }
 0x10e   :  { %v269_v37 = vsel %vm261_vm11, -1.0, %v3144_v6  ;;  %vm262_vm12 = vcmp.lt.f32.partialorder %v1665_v58, 0.0  ;;  %vm263_vm13 = vcmp.lt.f32.partialorder %v1666_v62, 0.0  ;;  %vm254_vm14 = vcmp.gt.f32.partialorder %v1665_v58, 0.0  ;;  %v287_v58 = vld [vmem:[#allocation5] sm:$0xff] }
 0x10f   :  { %v270_v5 = vsel %vm262_vm12, -1.0, %v3144_v6  ;;  %v277_v8 = vsel %vm253_vm10, 1.0, %v269_v37  ;;  %vm264_vm15 = vcmp.lt.f32.partialorder %v1667_v3, 0.0  ;;  %vm2252_vm0 = vcmp.gt.f32.partialorder %v1666_v62, 0.0 }
 0x110   :  { %v271_v10 = vsel %vm263_vm13, -1.0, %v3144_v6  ;;  %vm257_vm1 = vcmp.gt.f32.partialorder %v1668_v2, 0.0  ;;  %vm265_vm2 = vcmp.lt.f32.partialorder %v1668_v2, 0.0  ;;  %v278_v11 = vsel %vm254_vm14, 1.0, %v270_v5 }
 0x111   :  { %v273_v12 = vsel %vm265_vm2, -1.0, %v3144_v6  ;;  %v1669_v16 = vclamps-f32 %v234_v4, 1.0  ;;  %vm2259_vm3 = vcmp.gt.f32.partialorder %v1667_v3, 0.0  ;;  %v272_v41 = vsel %vm264_vm15, -1.0, %v3144_v6 }
 0x112   :  { %v281_v20 = vsel %vm257_vm1, 1.0, %v273_v12  ;;  %v236_v21 = vadd.f32 %v2199_v40, %v220_v7  ;;  %v1670_v22 = vclamps-f32 %v235_v13, 1.0  ;;  %v279_v40 = vsel %vm2252_vm0, 1.0, %v271_v10 }
 0x113   :  { %vm258_vm4 = vcmp.gt.f32.partialorder %v1669_v16, 0.0  ;;  %vm266_vm5 = vcmp.lt.f32.partialorder %v1669_v16, 0.0  ;;  %v717_v23 = vpack.c.bf16 %v281_v20, %v277_v8  ;;  %v1778_v31 = vpack.i.bf16 %v281_v20, %v277_v8 }
 0x114   :  { %v274_v25 = vsel %vm266_vm5, -1.0, %v3144_v6  ;;  %v1671_v29 = vclamps-f32 %v236_v21, 1.0  ;;  %vm259_vm6 = vcmp.gt.f32.partialorder %v1670_v22, 0.0  ;;  %vm267_vm7 = vcmp.lt.f32.partialorder %v1670_v22, 0.0 }
 0x115   :  { %v282_v32 = vsel %vm258_vm4, 1.0, %v274_v25  ;;  %v2267_v34 = vmul.bf16 %v2222_v63, %v717_v23  ;;  %v275_v35 = vsel %vm267_vm7, -1.0, %v3144_v6  ;;  %1779 = vrot.lane.b32.xlu1 %v1778_v31, %s2051_s1  ;;  %1759 = vrot.lane.b32.xlu0 %v1778_v31, %s2052_s13  ;;  %v280_v43 = vsel %vm2259_vm3, 1.0, %v272_v41 }
 0x116   :  { %vm260_vm8 = vcmp.gt.f32.partialorder %v1671_v29, 0.0  ;;  %vm268_vm9 = vcmp.lt.f32.partialorder %v1671_v29, 0.0  ;;  %v718_v38 = vpack.c.bf16 %v282_v32, %v278_v11  ;;  %v283_v44 = vsel %vm259_vm6, 1.0, %v275_v35  ;;  %v289_v29 = vld [vmem:[#allocation5 + $0x10] sm:$0x11] }
 0x117   :  { %v276_v45 = vsel %vm268_vm9, -1.0, %v3144_v6  ;;  %v719_v48 = vpack.c.bf16 %v283_v44, %v279_v40  ;;  %v1763_v51 = vpack.i.bf16 %v283_v44, %v279_v40  ;;  %v1833_v55 = vpack.i.bf16 %v282_v32, %v278_v11  ;;  %v290_v40 = vld [vmem:[#allocation5 + $0x18] sm:$0x11] }
 0x118   :  { %v284_v46 = vsel %vm260_vm8, 1.0, %v276_v45  ;;  %v2277_v49 = vmul.bf16 %v2222_v63, %v718_v38  ;;  %v562_v61 = vrot.slane %v2214_v53, %v2204_v42  ;;  %v1674_v2 = vcombine.high %v287_v58, %v287_v58 }
 0x119   :  { %v720_v50 = vpack.c.bf16 %v284_v46, %v280_v43  ;;  %v2280_v54 = vmul.bf16 %v2222_v63, %v719_v48  ;;  %1789 = vrot.lane.b32.xlu1 %v1778_v31, %s2053_s15  ;;  %1764 = vrot.lane.b32.xlu0 %v1763_v51, %s2052_s13  ;;  %v1838_v57 = vpack.i.bf16 %v284_v46, %v280_v43  ;;  %v2314_v7 = vand.u32 127, %v307_v33 }
 0x11a   :  { %v1675_v37 = vcombine.low %v288_v60, %v288_v60  ;;  %v1673_v3 = vcombine.low %v287_v58, %v287_v58  ;;  %v482_v4 = vshrl.u32 %v1674_v2, 16  ;;  %v2318_v8 = vsub.s32 0, %v2197_v39 }
 0x11b   :  { %v2284_v56 = vmul.bf16 %v2222_v63, %v720_v50  ;;  %v565_v63 = vpop.permute.xlu0 %564  ;;  %v2321_v10 = vpack.i.b16 %v1674_v2, %v1674_v2  ;;  %v2348_v38 = vsub.s32 1, %v2197_v39  ;;  %v2357_v46 = vsub.s32 2, %v2197_v39 }
 0x11c   :  { %v573_v62 = vrot.slane %v565_v63, %v2204_v42  ;;  %v475_v36 = vshrl.u32 %v1673_v3, 16  ;;  %v2323_v11 = vpack.i.b16 %v1675_v37, %v1675_v37  ;;  %v2325_v12 = vpack.i.b16 %v1673_v3, %v1673_v3 }
 0x11d   :  { %1794 = vrot.lane.b32.xlu1 %v1763_v51, %s2053_s15  ;;  %1769 = vrot.lane.b32.xlu0 %v1778_v31, %s2039_s14  ;;  %v2331_v17 = vpack.i.b16 %v482_v4, %v482_v4  ;;  %v379_v43 = vrot.slane %v2321_v10, %v2318_v8  ;;  %vm309_vm10 = vcmp.lt.s32.totalorder %v2314_v7, 17  ;;  %v2369_v58 = vsub.s32 3, %v2197_v39 }
 0x11e   :  { %v2311_v5 = vcombine.low %v562_v61, %v573_v62  ;;  %v2343_v32 = vpack.i.b16 %v475_v36, %v475_v36  ;;  %v386_v44 = vrot.slane %v2323_v11, %v2318_v8  ;;  %v372_v45 = vrot.slane %v2325_v12, %v2318_v8 }
 0x11f   :  { %v488_v50 = vrot.slane %v2331_v17, %v2318_v8  ;;  %v1688_v61 = vcombine.high %v290_v40, %v290_v40  ;;  %vm430_vm11 = vcmp.lt.s32.totalorder %v2314_v7, 16  ;;  %vm539_vm12 = vcmp.lt.s32.totalorder %v2314_v7, 15 }
 0x120   :  { %vm785_vm13 = vcmp.lt.s32.totalorder %v2314_v7, 127  ;;  %vm882_vm14 = vcmp.lt.s32.totalorder %v2314_v7, 113  ;;  %vm636_vm15 = vcmp.lt.s32.totalorder %v2314_v7, 1  ;;  %vm979_vm0 = vcmp.lt.s32.totalorder %v2314_v7, 112 }
 0x121   :  { %1834 = vrot.lane.b32.xlu1 %v1833_v55, %s2052_s13  ;;  %1774 = vrot.lane.b32.xlu0 %v1763_v51, %s2039_s14  ;;  %v1153_v6 = vpack.i.b16 %v1688_v61, %v1688_v61  ;;  %vm1076_vm1 = vcmp.lt.s32.totalorder %v2314_v7, 111  ;;  %v3212_v7 = vunpack.c.l.bf16 %v2284_v56 }
 0x123   :  { %v2434_v41 = vrot.slane %v1153_v6, %v2318_v8 }
 0x125   :  { %1839 = vrot.lane.b32.xlu1 %v1838_v57, %s2052_s13  ;;  %1784 = vrot.lane.b32.xlu0 %v1763_v51, %s2051_s1  ;;  %3152 = vst [vmem:[#allocation13_spill] sm:$0xff] %v2434_v41  ;;  %s2059_s13 = smov [#allocation7]  }
 0x129   :  { %1844 = vrot.lane.b32.xlu1 %v1833_v55, %s2039_s14  ;;  %1799 = vrot.lane.b32.xlu0 %v1778_v31, %s2054_s16 }
 0x12d   :  { %1849 = vrot.lane.b32.xlu1 %v1838_v57, %s2039_s14  ;;  %1804 = vrot.lane.b32.xlu0 %v1763_v51, %s2054_s16 }
 0x131   :  { %1854 = vrot.lane.b32.xlu1 %v1833_v55, %s2051_s1  ;;  %1809 = vrot.lane.b32.xlu0 %v1778_v31, %s2055_s17 }
 0x135   :  { %1859 = vrot.lane.b32.xlu1 %v1838_v57, %s2051_s1  ;;  %1814 = vrot.lane.b32.xlu0 %v1763_v51, %s2055_s17 }
 0x139   :  { %1879 = vrot.lane.b32.xlu1 %v1833_v55, %s2054_s16  ;;  %1819 = vrot.lane.b32.xlu0 %v1778_v31, %s2056_s2 }
 0x13d   :  { %1884 = vrot.lane.b32.xlu1 %v1838_v57, %s2054_s16  ;;  %1824 = vrot.lane.b32.xlu0 %v1763_v51, %s2056_s2 }
 0x141   :  { %1889 = vrot.lane.b32.xlu1 %v1833_v55, %s2055_s17  ;;  %1829 = vrot.lane.b32.xlu0 %v1778_v31, %s2057_s18 }
 0x145   :  { %1894 = vrot.lane.b32.xlu1 %v1838_v57, %s2055_s17  ;;  %1864 = vrot.lane.b32.xlu0 %v1833_v55, %s2053_s15 }
 0x149   :  { %1899 = vrot.lane.b32.xlu1 %v1833_v55, %s2056_s2  ;;  %1869 = vrot.lane.b32.xlu0 %v1838_v57, %s2053_s15  ;;  %s1649_s15 = sshll.u32 %s2059_s13, 4  ;;  %s1650_s15 = int_to_ptr.vmem [resolvable:$true] %s1649_s15 }
 0x14a   :  { %p2011_p3 = scmp.lt.s32.totalorder %s1650_s15, %s1650_s15 }
 0x14d   :  { %1904 = vrot.lane.b32.xlu1 %v1838_v57, %s2056_s2  ;;  %1874 = vrot.lane.b32.xlu0 %v1763_v51, %s2057_s18  ;;  %v1685_v51 = vcombine.low %v289_v29, %v289_v29 }
 0x151   :  { %1909 = vrot.lane.b32.xlu1 %v1833_v55, %s2057_s18  ;;  %1180 = vperm.xlu0 %1756, %v2162_v15   ;;  %v1686_v55 = vcombine.high %v289_v29, %v289_v29 }
 0x155   :  { %1914 = vrot.lane.b32.xlu1 %v1838_v57, %s2057_s18  ;;  %1920 = vset.pattern.permute.xlu0 %v3138_v28 }
 0x156   :  { %1200 = vperm.xlu0 %1920, %v2172_v19  }
 0x159   :  { %1184 = vperm.xlu1 %1918, %v2172_v19   ;;  %v1676_v19 = vcombine.high %v288_v60, %v288_v60  ;;  %v1687_v60 = vcombine.low %v290_v40, %v290_v40  ;;  %v1132_v40 = vpack.i.b16 %v1685_v51, %v1685_v51 }
 0x15a   :  { %1923 = vset.pattern.permute.xlu0 %v3143_v30 }
 0x15b   :  { %v496_v53 = vshrl.u32 %v1676_v19, 16  ;;  %v2329_v16 = vpack.i.b16 %v1676_v19, %v1676_v19  ;;  %v1146_v30 = vpack.i.b16 %v1687_v60, %v1687_v60 }
 0x15d   :  { %1919 = vset.pattern.permute.xlu1 %v3138_v28  ;;  %v2345_v35 = vpack.i.b16 %v496_v53, %v496_v53  ;;  %v393_v48 = vrot.slane %v2329_v16, %v2318_v8  ;;  %v1139_v28 = vpack.i.b16 %v1686_v55, %v1686_v55  ;;  %v2431_v20 = vrot.slane %v1146_v30, %v2318_v8 }
 0x15e   :  { %1196 = vperm.xlu1 %1919, %v2162_v15   ;;  %v489_v15 = vshrl.u32 %v1675_v37, 16 }
 0x15f   :  { %v2425_v42 = vrot.slane %v1139_v28, %v2318_v8  ;;  %3151 = vst [vmem:[#allocation12_spill] sm:$0xff] %v2431_v20 }
 0x160   :  { %v2340_v25 = vpack.i.b16 %v489_v15, %v489_v15 }
 0x162   :  { %1921 = vset.pattern.permute.xlu1 %v2044_v27  ;;  %v495_v63 = vrot.slane %v2340_v25, %v2318_v8  ;;  %v2422_v27 = vrot.slane %v1132_v40, %v2318_v8 }
 0x164   :  { %3150 = vst [vmem:[#allocation11_spill] sm:$0xff] %v2422_v27 }
 0x187   :  { %v2336_v22 = vpop.permute.xlu1 %1779  ;;  %v2338_v23 = vpop.permute.xlu0 %1759 }
 0x188   :  { %v1762_v60 = vunpack.i.h.bf16 %v2338_v23  ;;  %v1761_v55 = vunpack.i.l.bf16 %v2338_v23 }
 0x18b   :  { %v2363_v57 = vpop.permute.xlu1 %1789  ;;  %v2371_v62 = vpop.permute.xlu0 %1764 }
 0x18c   :  { %v1767_v13 = vunpack.i.h.bf16 %v2371_v62  ;;  %v1766_v40 = vunpack.i.l.bf16 %v2371_v62 }
 0x18f   :  { %v2393_v26 = vpop.permute.xlu1 %1794  ;;  %v2399_v31 = vpop.permute.xlu0 %1769 }
 0x190   :  { %v1772_v30 = vunpack.i.h.bf16 %v2399_v31  ;;  %v1771_v4 = vunpack.i.l.bf16 %v2399_v31 }
 0x193   :  { %v1835_v61 = vpop.permute.xlu1 %1834  ;;  %v2438_v33 = vpop.permute.xlu0 %1774 }
 0x194   :  { %v1837_v51 = vunpack.i.h.bf16 %v1835_v61  ;;  %v1836_v28 = vunpack.i.l.bf16 %v1835_v61  ;;  %v1776_v29 = vunpack.i.l.bf16 %v2438_v33 }
 0x196   :  { %v312_v6 = vsel %vm309_vm10, %v1836_v28, %v1766_v40  ;;  %v313_v0 = vsel %vm309_vm10, %v1837_v51, %v1767_v13  ;;  %v314_v62 = vsel %vm309_vm10, %v1761_v55, %v1836_v28  ;;  %v315_v61 = vsel %vm309_vm10, %v1762_v60, %v1837_v51 }
 0x197   :  { %v319_v36 = vpack.c.bf16 %v315_v61, %v314_v62  ;;  %v320_v1 = vpack.c.bf16 %v313_v0, %v312_v6  ;;  %v1840_v15 = vpop.permute.xlu1 %1839  ;;  %v2456_v3 = vpop.permute.xlu0 %1784  ;;  %v1777_v51 = vunpack.i.h.bf16 %v2438_v33 }
 0x198   :  { %v1842_v39 = vunpack.i.h.bf16 %v1840_v15  ;;  %v1841_v19 = vunpack.i.l.bf16 %v1840_v15 }
 0x199   :  { %v353_v28 = vmul.bf16 %v2208_v47, %v319_v36  ;;  %v354_v2 = vmul.bf16 %v2208_v47, %v320_v1 }
 0x19a   :  { %v310_v0 = vsel %vm309_vm10, %v1766_v40, %v1841_v19  ;;  %v311_v6 = vsel %vm309_vm10, %v1767_v13, %v1842_v39  ;;  %v316_v31 = vsel %vm309_vm10, %v1841_v19, %v1761_v55  ;;  %v317_v15 = vsel %vm309_vm10, %v1842_v39, %v1762_v60 }
 0x19b   :  { %v2473_v1 = vmul.bf16 %v379_v43, %v353_v28  ;;  %v396_v33 = vmul.bf16 %v386_v44, %v354_v2  ;;  %v318_v36 = vpack.c.bf16 %v317_v15, %v316_v31  ;;  %v321_v40 = vpack.c.bf16 %v311_v6, %v310_v0  ;;  %v1845_v62 = vpop.permute.xlu1 %1844  ;;  %v2480_v53 = vpop.permute.xlu0 %1799 }
 0x19c   :  { %v1847_v19 = vunpack.i.h.bf16 %v1845_v62  ;;  %v1846_v55 = vunpack.i.l.bf16 %v1845_v62  ;;  %vm1276_vm10 = vcmask 15360  }
 0x19d   :  { %v399_v39 = vunpack.c.l.bf16 %v2473_v1  ;;  %v400_v60 = vunpack.c.l.bf16 %v396_v33  ;;  %v403_v43 = vunpack.c.h.bf16 %v2473_v1  ;;  %v404_v28 = vunpack.c.h.bf16 %v396_v33 }
 0x19e   :  { %v352_v44 = vmul.bf16 %v2208_v47, %v318_v36  ;;  %v355_v2 = vmul.bf16 %v2208_v47, %v321_v40  ;;  %v433_v0 = vsel %vm430_vm11, %v1846_v55, %v1776_v29  ;;  %v434_v6 = vsel %vm430_vm11, %v1847_v19, %v1777_v51 }
 0x19f   :  { %v435_v31 = vsel %vm430_vm11, %v1771_v4, %v1846_v55  ;;  %v436_v15 = vsel %vm430_vm11, %v1772_v30, %v1847_v19  ;;  %v441_v1 = vpack.c.bf16 %v434_v6, %v433_v0  ;;  %v1850_v62 = vpop.permute.xlu1 %1849  ;;  %v2505_v55 = vpop.permute.xlu0 %1804 }
 0x1a0   :  { %v2499_v47 = vmul.bf16 %v372_v45, %v352_v44  ;;  %v397_v36 = vmul.bf16 %v393_v48, %v355_v2  ;;  %v440_v40 = vpack.c.bf16 %v436_v15, %v435_v31  ;;  %v1852_v0 = vunpack.i.h.bf16 %v1850_v62 }
 0x1a1   :  { %v473_v19 = vmul.bf16 %v2212_v52, %v441_v1  ;;  %v1851_v6 = vunpack.i.l.bf16 %v1850_v62 }
 0x1a2   :  { %v398_v23 = vunpack.c.l.bf16 %v2499_v47  ;;  %v401_v13 = vunpack.c.l.bf16 %v397_v36  ;;  %v402_v45 = vunpack.c.h.bf16 %v2499_v47  ;;  %v405_v44 = vunpack.c.h.bf16 %v397_v36 }
 0x1a3   :  { %v472_v61 = vmul.bf16 %v2212_v52, %v440_v40  ;;  %v505_v48 = vmul.bf16 %v495_v63, %v473_v19  ;;  %v431_v2 = vsel %vm430_vm11, %v1776_v29, %v1851_v6  ;;  %v432_v31 = vsel %vm430_vm11, %v1777_v51, %v1852_v0  ;;  %v1855_v15 = vpop.permute.xlu1 %1854  ;;  %v2524_v40 = vpop.permute.xlu0 %1809 }
 0x1a4   :  { %v437_v1 = vsel %vm430_vm11, %v1851_v6, %v1771_v4  ;;  %v438_v62 = vsel %vm430_vm11, %v1852_v0, %v1772_v30  ;;  %v442_v47 = vpack.c.bf16 %v432_v31, %v431_v2  ;;  %v1857_v33 = vunpack.i.h.bf16 %v1855_v15 }
 0x1a5   :  { %v504_v63 = vmul.bf16 %v488_v50, %v472_v61  ;;  %v509_v29 = vunpack.c.l.bf16 %v505_v48  ;;  %v513_v19 = vunpack.c.h.bf16 %v505_v48  ;;  %v439_v21 = vpack.c.bf16 %v438_v62, %v437_v1 }
 0x1a6   :  { %v474_v51 = vmul.bf16 %v2212_v52, %v442_v47  ;;  %v1856_v37 = vunpack.i.l.bf16 %v1855_v15  ;;  %v3153_v50 = vrot.slane %v2345_v35, %v2318_v8  ;;  %v3154_v48 = vunpack.i.l.bf16 %v2456_v3 }
 0x1a7   :  { %v508_v6 = vunpack.c.l.bf16 %v504_v63  ;;  %v512_v30 = vunpack.c.h.bf16 %v504_v63  ;;  %v517_v0 = vadd.f32 %v509_v29, %v400_v60  ;;  %v521_v2 = vadd.f32 %v513_v19, %v404_v28  ;;  %v1860_v31 = vpop.permute.xlu1 %1859  ;;  %v2544_v28 = vpop.permute.xlu0 %1814 }
 0x1a8   :  { %v471_v36 = vmul.bf16 %v2212_v52, %v439_v21  ;;  %v506_v61 = vmul.bf16 %v3153_v50, %v474_v51  ;;  %v542_v15 = vsel %vm539_vm12, %v1856_v37, %v3154_v48  ;;  %v3155_v1 = vunpack.i.h.bf16 %v2456_v3 }
 0x1a9   :  { %v516_v62 = vadd.f32 %v508_v6, %v399_v39  ;;  %v520_v47 = vadd.f32 %v512_v30, %v403_v43  ;;  %v3156_v52 = vunpack.i.l.bf16 %v2336_v22  ;;  %v3157_v63 = vunpack.i.h.bf16 %v2336_v22 }
 0x1aa   :  { %v543_v60 = vsel %vm539_vm12, %v1857_v33, %v3155_v1  ;;  %v3158_v19 = vrot.slane %v2343_v32, %v2318_v8  ;;  %v510_v50 = vunpack.c.l.bf16 %v506_v61  ;;  %v514_v48 = vunpack.c.h.bf16 %v506_v61 }
 0x1ab   :  { %v544_v21 = vsel %vm539_vm12, %v3156_v52, %v1856_v37  ;;  %v545_v29 = vsel %vm539_vm12, %v3157_v63, %v1857_v33  ;;  %v550_v4 = vpack.c.bf16 %v543_v60, %v542_v15  ;;  %v1862_v43 = vunpack.i.h.bf16 %v1860_v31  ;;  %v1880_v30 = vpop.permute.xlu1 %1879 }
 0x1ac   :  { %v503_v51 = vmul.bf16 %v3158_v19, %v471_v36  ;;  %v549_v1 = vpack.c.bf16 %v545_v29, %v544_v21  ;;  %v1861_v6 = vunpack.i.l.bf16 %v1860_v31  ;;  %v518_v52 = vadd.f32 %v510_v50, %v401_v13  ;;  %v2576_v29 = vpop.permute.xlu0 %1819 }
 0x1ad   :  { %v522_v20 = vadd.f32 %v514_v48, %v405_v44  ;;  %v582_v33 = vmul.bf16 %v2311_v5, %v550_v4  ;;  %v3159_v63 = vunpack.i.l.bf16 %v2456_v3  ;;  %v3160_v61 = vunpack.i.h.bf16 %v2456_v3 }
 0x1ae   :  { %v507_v41 = vunpack.c.l.bf16 %v503_v51  ;;  %v511_v37 = vunpack.c.h.bf16 %v503_v51  ;;  %v581_v27 = vmul.bf16 %v2311_v5, %v549_v1  ;;  %v3161_v21 = vunpack.i.l.bf16 %v2336_v22 }
 0x1af   :  { %v540_v36 = vsel %vm539_vm12, %v3159_v63, %v1861_v6  ;;  %v541_v15 = vsel %vm539_vm12, %v3160_v61, %v1862_v43  ;;  %v3162_v44 = vunpack.i.h.bf16 %v2336_v22  ;;  %v3163_v3 = vrot.slane %v2321_v10, %v2348_v38  ;;  %v1885_v50 = vpop.permute.xlu1 %1884 }
 0x1b0   :  { %v515_v31 = vadd.f32 %v507_v41, %v398_v23  ;;  %v519_v60 = vadd.f32 %v511_v37, %v402_v45  ;;  %v546_v13 = vsel %vm539_vm12, %v1861_v6, %v3161_v21  ;;  %v3164_v41 = vrot.slane %v2323_v11, %v2348_v38 }
 0x1b1   :  { %v547_v4 = vsel %vm539_vm12, %v1862_v43, %v3162_v44  ;;  %v601_v19 = vmul.bf16 %v3163_v3, %v581_v27  ;;  %v551_v51 = vpack.c.bf16 %v541_v15, %v540_v36  ;;  %v1817_v48 = vunpack.i.h.bf16 %v2544_v28 }
 0x1b2   :  { %v602_v23 = vmul.bf16 %v3164_v41, %v582_v33  ;;  %v548_v45 = vpack.c.bf16 %v547_v4, %v546_v13  ;;  %v1816_v22 = vunpack.i.l.bf16 %v2544_v28  ;;  %v1882_v1 = vunpack.i.h.bf16 %v1880_v30 }
 0x1b3   :  { %v1881_v6 = vunpack.i.l.bf16 %v1880_v30  ;;  %v605_v43 = vunpack.c.l.bf16 %v601_v19  ;;  %v609_v63 = vunpack.c.h.bf16 %v601_v19  ;;  %v583_v27 = vmul.bf16 %v2311_v5, %v551_v51  ;;  %v2619_v51 = vpop.permute.xlu0 %1824 }
 0x1b4   :  { %v606_v37 = vunpack.c.l.bf16 %v602_v23  ;;  %v610_v61 = vunpack.c.h.bf16 %v602_v23  ;;  %v580_v21 = vmul.bf16 %v2311_v5, %v548_v45  ;;  %v3165_v44 = vunpack.i.l.bf16 %v2505_v55  ;;  %v1890_v5 = vpop.permute.xlu1 %1889 }
 0x1b5   :  { %v3166_v36 = vunpack.i.h.bf16 %v2505_v55  ;;  %v2596_v13 = vadd.f32 %v605_v43, %v516_v62  ;;  %v2600_v4 = vadd.f32 %v609_v63, %v520_v47  ;;  %v3167_v19 = vrot.slane %v2325_v12, %v2348_v38 }
 0x1b6   :  { %v788_v33 = vsel %vm785_vm13, %v1881_v6, %v3165_v44  ;;  %v2598_v30 = vadd.f32 %v606_v37, %v517_v0  ;;  %v2602_v3 = vadd.f32 %v610_v61, %v521_v2  ;;  %v3168_v23 = vrot.slane %v2329_v16, %v2348_v38 }
 0x1b7   :  { %v789_v15 = vsel %vm785_vm13, %v1882_v1, %v3166_v36  ;;  %v600_v41 = vmul.bf16 %v3167_v19, %v580_v21  ;;  %v3169_v62 = vunpack.i.l.bf16 %v2480_v53  ;;  %v3170_v47 = vunpack.i.h.bf16 %v2480_v53 }
 0x1b8   :  { %v603_v45 = vmul.bf16 %v3168_v23, %v583_v27  ;;  %v795_v37 = vpack.c.bf16 %v789_v15, %v788_v33  ;;  %v1821_v61 = vunpack.i.l.bf16 %v2576_v29  ;;  %v1887_v23 = vunpack.i.h.bf16 %v1885_v50 }
 0x1b9   :  { %v790_v0 = vsel %vm785_vm13, %v3169_v62, %v1881_v6  ;;  %v791_v2 = vsel %vm785_vm13, %v3170_v47, %v1882_v1  ;;  %v604_v21 = vunpack.c.l.bf16 %v600_v41  ;;  %v608_v44 = vunpack.c.h.bf16 %v600_v41 }
 0x1ba   :  { %v794_v43 = vpack.c.bf16 %v791_v2, %v790_v0  ;;  %v607_v27 = vunpack.c.l.bf16 %v603_v45  ;;  %v611_v36 = vunpack.c.h.bf16 %v603_v45  ;;  %v827_v6 = vmul.bf16 %v2227_v9, %v795_v37 }
 0x1bb   :  { %v1886_v62 = vunpack.i.l.bf16 %v1885_v50  ;;  %v2625_v39 = vadd.f32 %v604_v21, %v515_v31  ;;  %v2629_v0 = vadd.f32 %v608_v44, %v519_v60  ;;  %v3171_v15 = vrot.slane %v2343_v32, %v2357_v46  ;;  %v1895_v60 = vpop.permute.xlu1 %1894 }
 0x1bc   :  { %v826_v19 = vmul.bf16 %v2227_v9, %v794_v43  ;;  %v2627_v1 = vadd.f32 %v607_v27, %v518_v52  ;;  %v2631_v33 = vadd.f32 %v611_v36, %v522_v20  ;;  %v3172_v41 = vrot.slane %v2331_v17, %v2357_v46  ;;  %v2660_v36 = vpop.permute.xlu0 %1829 }
 0x1bd   :  { %v3173_v50 = vunpack.i.l.bf16 %v2505_v55  ;;  %v3174_v31 = vunpack.i.h.bf16 %v2505_v55  ;;  %v3175_v2 = vunpack.i.l.bf16 %v2480_v53  ;;  %v3176_v37 = vunpack.i.h.bf16 %v2480_v53 }
 0x1be   :  { %v2636_v47 = vmul.bf16 %v3171_v15, %v826_v19  ;;  %v2641_v45 = vmul.bf16 %v3172_v41, %v827_v6  ;;  %v1827_v44 = vunpack.i.h.bf16 %v2619_v51  ;;  %v1892_v41 = vunpack.i.h.bf16 %v1890_v5 }
 0x1bf   :  { %v786_v52 = vsel %vm785_vm13, %v3173_v50, %v1886_v62  ;;  %v787_v20 = vsel %vm785_vm13, %v3174_v31, %v1887_v23  ;;  %v792_v43 = vsel %vm785_vm13, %v1886_v62, %v3175_v2  ;;  %v793_v21 = vsel %vm785_vm13, %v1887_v23, %v3176_v37  ;;  %v1900_v62 = vpop.permute.xlu1 %1899 }
 0x1c0   :  { %v796_v27 = vpack.c.bf16 %v787_v20, %v786_v52  ;;  %v797_v15 = vpack.c.bf16 %v793_v21, %v792_v43  ;;  %v1826_v23 = vunpack.i.l.bf16 %v2619_v51  ;;  %v1891_v50 = vunpack.i.l.bf16 %v1890_v5  ;;  %v1865_v31 = vpop.permute.xlu0 %1864 }
 0x1c1   :  { %v1897_v20 = vunpack.i.h.bf16 %v1895_v60  ;;  %v3177_v37 = vrot.slane %v2340_v25, %v2357_v46  ;;  %v886_v43 = vsel %vm882_vm14, %v1892_v41, %v1817_v48  ;;  %v3178_v21 = vunpack.i.h.bf16 %v2524_v40 }
 0x1c2   :  { %v828_v53 = vmul.bf16 %v2227_v9, %v796_v27  ;;  %v829_v2 = vmul.bf16 %v2227_v9, %v797_v15  ;;  %v885_v9 = vsel %vm882_vm14, %v1891_v50, %v1816_v22  ;;  %v3179_v27 = vunpack.i.l.bf16 %v2524_v40 }
 0x1c3   :  { %v888_v5 = vsel %vm882_vm14, %v3178_v21, %v1892_v41  ;;  %v3180_v41 = vrot.slane %v2345_v35, %v2357_v46  ;;  %v892_v63 = vpack.c.bf16 %v886_v43, %v885_v9  ;;  %v3182_v46 = vunpack.i.h.bf16 %v2524_v40 }
 0x1c4   :  { %v2675_v6 = vmul.bf16 %v3177_v37, %v828_v53  ;;  %v887_v15 = vsel %vm882_vm14, %v3179_v27, %v1891_v50  ;;  %v1896_v53 = vunpack.i.l.bf16 %v1895_v60  ;;  %v884_v37 = vsel %vm882_vm14, %v1817_v48, %v1897_v20 }
 0x1c5   :  { %v2701_v21 = vmul.bf16 %v3180_v41, %v829_v2  ;;  %v891_v52 = vpack.c.bf16 %v888_v5, %v887_v15  ;;  %v3181_v48 = vmov %v3179_v27  ;;  %v890_v2 = vsel %vm882_vm14, %v1897_v20, %v3182_v46 }
 0x1c6   :  { %v852_v19 = vunpack.c.l.bf16 %v2675_v6  ;;  %v883_v60 = vsel %vm882_vm14, %v1816_v22, %v1896_v53  ;;  %v889_v50 = vsel %vm882_vm14, %v1896_v53, %v3181_v48  ;;  %v924_v9 = vmul.bf16 %v2231_v14, %v892_v63 }
 0x1c7   :  { %v853_v27 = vunpack.c.l.bf16 %v2701_v21  ;;  %v923_v43 = vmul.bf16 %v2231_v14, %v891_v52  ;;  %v893_v28 = vpack.c.bf16 %v884_v37, %v883_v60  ;;  %v894_v22 = vpack.c.bf16 %v890_v2, %v889_v50  ;;  %v1905_v60 = vpop.permute.xlu1 %1904 }
 0x1c8   :  { %v1867_v15 = vunpack.i.h.bf16 %v1865_v31  ;;  %v1866_v41 = vunpack.i.l.bf16 %v1865_v31  ;;  %v3183_v53 = vrot.slane %v2325_v12, %v2369_v58  ;;  %v1902_v20 = vunpack.i.h.bf16 %v1900_v62 }
 0x1c9   :  { %v925_v40 = vmul.bf16 %v2231_v14, %v893_v28  ;;  %v1901_v46 = vunpack.i.l.bf16 %v1900_v62  ;;  %v3184_v5 = vrot.slane %v2321_v10, %v2369_v58  ;;  %v926_v52 = vmul.bf16 %v2231_v14, %v894_v22 }
 0x1ca   :  { %v2724_v48 = vmul.bf16 %v3183_v53, %v923_v43  ;;  %v3185_v63 = vunpack.i.h.bf16 %v2393_v26  ;;  %v3186_v12 = vunpack.i.h.bf16 %v2363_v57  ;;  %v3187_v10 = vrot.slane %v2323_v11, %v2369_v58 }
 0x1cb   :  { %v2730_v55 = vmul.bf16 %v3184_v5, %v924_v9  ;;  %v3188_v14 = vunpack.i.l.bf16 %v2393_v26  ;;  %v3189_v9 = vrot.slane %v2329_v16, %v2369_v58  ;;  %v982_v16 = vsel %vm979_vm0, %v1901_v46, %v1826_v23  ;;  %v1910_v50 = vpop.permute.xlu1 %1909 }
 0x1cc   :  { %v640_v31 = vsel %vm636_vm15, %v1867_v15, %v3185_v63  ;;  %v642_v37 = vsel %vm636_vm15, %v3186_v12, %v1867_v15  ;;  %v2746_v2 = vmul.bf16 %v3187_v10, %v925_v40  ;;  %v3190_v15 = vunpack.i.l.bf16 %v2363_v57  ;;  %v1870_v10 = vpop.permute.xlu0 %1869 }
 0x1cd   :  { %v639_v5 = vsel %vm636_vm15, %v1866_v41, %v3188_v14  ;;  %v2757_v22 = vmul.bf16 %v3189_v9, %v926_v52  ;;  %v1872_v28 = vunpack.i.h.bf16 %v1870_v10  ;;  %v1871_v40 = vunpack.i.l.bf16 %v1870_v10 }
 0x1ce   :  { %v641_v11 = vsel %vm636_vm15, %v3190_v15, %v1866_v41  ;;  %v647_v12 = vpack.c.bf16 %v640_v31, %v639_v5  ;;  %v983_v41 = vsel %vm979_vm0, %v1902_v20, %v1827_v44  ;;  %v984_v31 = vsel %vm979_vm0, %v1821_v61, %v1901_v46 }
 0x1cf   :  { %v646_v63 = vpack.c.bf16 %v642_v37, %v641_v11  ;;  %v3191_v5 = vunpack.i.h.bf16 %v2576_v29  ;;  %v989_v11 = vpack.c.bf16 %v983_v41, %v982_v16  ;;  %v3193_v14 = vrot.slane %v2340_v25, %v2348_v38 }
 0x1d0   :  { %v679_v37 = vmul.bf16 %v2218_v59, %v647_v12  ;;  %v1907_v53 = vunpack.i.h.bf16 %v1905_v60  ;;  %v1906_v43 = vunpack.i.l.bf16 %v1905_v60  ;;  %v3194_v16 = vunpack.i.h.bf16 %v2393_v26 }
 0x1d1   :  { %v678_v52 = vmul.bf16 %v2218_v59, %v646_v63  ;;  %v985_v9 = vsel %vm979_vm0, %v3191_v5, %v1902_v20  ;;  %v3192_v63 = vrot.slane %v2331_v17, %v2348_v38  ;;  %v1021_v20 = vmul.bf16 %v2234_v18, %v989_v11 }
 0x1d2   :  { %v988_v15 = vpack.c.bf16 %v985_v9, %v984_v31  ;;  %v699_v46 = vmul.bf16 %v3193_v14, %v679_v37  ;;  %v638_v10 = vsel %vm636_vm15, %v3194_v16, %v1872_v28  ;;  %v3195_v41 = vunpack.i.h.bf16 %v2363_v57 }
 0x1d3   :  { %v698_v12 = vmul.bf16 %v3192_v63, %v678_v52  ;;  %v3196_v60 = vrot.slane %v2343_v32, %v2369_v58  ;;  %v3198_v63 = vunpack.i.l.bf16 %v2393_v26 }
 0x1d4   :  { %v1020_v62 = vmul.bf16 %v2234_v18, %v988_v15  ;;  %v644_v52 = vsel %vm636_vm15, %v1872_v28, %v3195_v41  ;;  %v703_v5 = vunpack.c.l.bf16 %v699_v46  ;;  %v707_v14 = vunpack.c.h.bf16 %v699_v46  ;;  %v1875_v46 = vpop.permute.xlu0 %1874 }
 0x1d5   :  { %v702_v31 = vunpack.c.l.bf16 %v698_v12  ;;  %v706_v9 = vunpack.c.h.bf16 %v698_v12  ;;  %v3197_v15 = vrot.slane %v2331_v17, %v2369_v58  ;;  %v637_v16 = vsel %vm636_vm15, %v3198_v63, %v1871_v40 }
 0x1d6   :  { %v2805_v37 = vmul.bf16 %v3196_v60, %v1020_v62  ;;  %v3199_v28 = vunpack.i.l.bf16 %v2363_v57  ;;  %v711_v62 = vadd.f32 %v703_v5, %v2598_v30  ;;  %v2826_v17 = vadd.f32 %v707_v14, %v2602_v3 }
 0x1d7   :  { %v2810_v11 = vmul.bf16 %v3197_v15, %v1021_v20  ;;  %v710_v41 = vadd.f32 %v702_v31, %v2596_v13  ;;  %v2823_v60 = vadd.f32 %v706_v9, %v2600_v4  ;;  %v648_v20 = vpack.c.bf16 %v638_v10, %v637_v16 }
 0x1d8   :  { %v643_v12 = vsel %vm636_vm15, %v1871_v40, %v3199_v28  ;;  %v980_v57 = vsel %vm979_vm0, %v1826_v23, %v1906_v43  ;;  %v981_v13 = vsel %vm979_vm0, %v1827_v44, %v1907_v53  ;;  %v1915_v40 = vpop.permute.xlu1 %1914  ;;  %v986_v30 = vsel %vm979_vm0, %v1906_v43, %v1821_v61 }
 0x1d9   :  { %v645_v26 = vpack.c.bf16 %v644_v52, %v643_v12  ;;  %v3200_v4 = vunpack.i.h.bf16 %v2576_v29  ;;  %v990_v10 = vpack.c.bf16 %v981_v13, %v980_v57  ;;  %v1877_v52 = vunpack.i.h.bf16 %v1875_v46 }
 0x1da   :  { %v680_v51 = vmul.bf16 %v2218_v59, %v648_v20  ;;  %v1876_v5 = vunpack.i.l.bf16 %v1875_v46  ;;  %v1912_v9 = vunpack.i.h.bf16 %v1910_v50  ;;  %v1911_v14 = vunpack.i.l.bf16 %v1910_v50 }
 0x1db   :  { %v987_v3 = vsel %vm979_vm0, %v1907_v53, %v3200_v4  ;;  %v677_v23 = vmul.bf16 %v2218_v59, %v645_v26  ;;  %v1022_v44 = vmul.bf16 %v2234_v18, %v990_v10  ;;  %v1917_v15 = vunpack.i.h.bf16 %v1915_v40 }
 0x1dc   :  { %v991_v31 = vpack.c.bf16 %v987_v3, %v986_v30  ;;  %v3201_v61 = vrot.slane %v2343_v32, %v2348_v38  ;;  %v3202_v43 = vrot.slane %v2345_v35, %v2348_v38  ;;  %v1916_v16 = vunpack.i.l.bf16 %v1915_v40 }
 0x1dd   :  { %v3203_v59 = vrot.slane %v2340_v25, %v2369_v58  ;;  %v1079_v50 = vsel %vm1076_vm1, %v1911_v14, %v1876_v5  ;;  %v1080_v12 = vsel %vm1076_vm1, %v1912_v9, %v1877_v52  ;;  %v3204_v32 = vunpack.i.l.bf16 %v2660_v36 }
 0x1de   :  { %v697_v29 = vmul.bf16 %v3201_v61, %v677_v23  ;;  %v700_v53 = vmul.bf16 %v3202_v43, %v680_v51  ;;  %v1023_v63 = vmul.bf16 %v2234_v18, %v991_v31  ;;  %v3205_v25 = vrot.slane %v2345_v35, %v2369_v58 }
 0x1df   :  { %v2857_v28 = vmul.bf16 %v3203_v59, %v1022_v44  ;;  %v1081_v38 = vsel %vm1076_vm1, %v3204_v32, %v1911_v14  ;;  %v3206_v13 = vunpack.i.h.bf16 %v2660_v36  ;;  %v1086_v30 = vpack.c.bf16 %v1080_v12, %v1079_v50  ;;  %v3215_v12 = vld [vmem:[#allocation11_spill] sm:$0xff] }
 0x1e0   :  { %v701_v46 = vunpack.c.l.bf16 %v697_v29  ;;  %v704_v26 = vunpack.c.l.bf16 %v700_v53  ;;  %v705_v18 = vunpack.c.h.bf16 %v697_v29  ;;  %v708_v20 = vunpack.c.h.bf16 %v700_v53 }
 0x1e1   :  { %v2870_v57 = vmul.bf16 %v3205_v25, %v1023_v63  ;;  %v1082_v40 = vsel %vm1076_vm1, %v3206_v13, %v1912_v9  ;;  %v1077_v4 = vsel %vm1076_vm1, %v1876_v5, %v1916_v16  ;;  %v1118_v58 = vmul.bf16 %v2238_v24, %v1086_v30  ;;  %v3219_v30 = vld [vmem:[#allocation13_spill] sm:$0xff] }
 0x1e2   :  { %v709_v3 = vadd.f32 %v701_v46, %v2625_v39  ;;  %v712_v10 = vadd.f32 %v704_v26, %v2627_v1  ;;  %v713_v23 = vadd.f32 %v705_v18, %v2629_v0  ;;  %v716_v51 = vadd.f32 %v708_v20, %v2631_v33  ;;  %v3216_v46 = vld [vmem:[#allocation12_spill] sm:$0xff] }
 0x1e3   :  { %v1085_v35 = vpack.c.bf16 %v1082_v40, %v1081_v38  ;;  %v1078_v31 = vsel %vm1076_vm1, %v1877_v52, %v1917_v15  ;;  %v3207_v44 = vmov %v3204_v32  ;;  %v3208_v5 = vmov %v3206_v13 }
 0x1e4   :  { %v1083_v9 = vsel %vm1076_vm1, %v1916_v16, %v3207_v44  ;;  %v1084_v39 = vsel %vm1076_vm1, %v1917_v15, %v3208_v5  ;;  %v1087_v1 = vpack.c.bf16 %v1078_v31, %v1077_v4  ;;  %v3209_v0 = vunpack.c.l.bf16 %v2267_v34 }
 0x1e5   :  { %v3210_v14 = vunpack.c.l.bf16 %v2277_v49  ;;  %v1117_v29 = vmul.bf16 %v2238_v24, %v1085_v35  ;;  %v2899_v52 = vmul.bf16 %v2425_v42, %v1118_v58  ;;  %v1088_v43 = vpack.c.bf16 %v1084_v39, %v1083_v9 }
 0x1e6   :  { %v761_v33 = vadd.f32 %v3209_v0, %v709_v3  ;;  %v3211_v53 = vunpack.c.l.bf16 %v2280_v54  ;;  %v1119_v36 = vmul.bf16 %v2238_v24, %v1087_v1  ;;  %v764_v15 = vadd.f32 %v3212_v7, %v712_v10  ;;  %v1185_v0 = vpop.permute.xlu1 %1184 }
 0x1e7   :  { %v762_v61 = vadd.f32 %v3210_v14, %v710_v41  ;;  %v3213_v16 = vunpack.c.l.bf16 %v2636_v47  ;;  %v3214_v50 = vunpack.c.l.bf16 %v2641_v45  ;;  %v1159_v32 = vmul.bf16 %v3215_v12, %v1117_v29 }
 0x1e8   :  { %v763_v63 = vadd.f32 %v3211_v53, %v711_v62  ;;  %v1120_v42 = vmul.bf16 %v2238_v24, %v1088_v43  ;;  %v1044_v62 = vunpack.c.l.bf16 %v2805_v37  ;;  %v1161_v26 = vmul.bf16 %v3216_v46, %v1119_v36 }
 0x1e9   :  { %v858_v59 = vadd.f32 %v3213_v16, %v761_v33  ;;  %v859_v41 = vadd.f32 %v3214_v50, %v762_v61  ;;  %v861_v18 = vadd.f32 %v853_v27, %v764_v15  ;;  %v3217_v20 = vunpack.c.l.bf16 %v2724_v48  ;;  %v1181_v33 = vpop.permute.xlu0 %1180 }
 0x1ea   :  { %v860_v38 = vadd.f32 %v852_v19, %v763_v63  ;;  %v3218_v13 = vunpack.c.l.bf16 %v2730_v55  ;;  %v1162_v4 = vmul.bf16 %v3219_v30, %v1120_v42  ;;  %v3220_v24 = vunpack.c.l.bf16 %v2746_v2 }
 0x1eb   :  { %v955_v25 = vadd.f32 %v3217_v20, %v858_v59  ;;  %v1045_v19 = vunpack.c.l.bf16 %v2810_v11  ;;  %v1046_v10 = vunpack.c.l.bf16 %v2857_v28  ;;  %v3221_v35 = vunpack.c.l.bf16 %v2757_v22 }
 0x1ec   :  { %v956_v40 = vadd.f32 %v3218_v13, %v859_v41  ;;  %v957_v3 = vadd.f32 %v3220_v24, %v860_v38  ;;  %v1047_v27 = vunpack.c.l.bf16 %v2870_v57  ;;  %v1163_v44 = vunpack.c.l.bf16 %v1159_v32  ;;  %v1197_v24 = vpop.permute.xlu1 %1196 }
 0x1ed   :  { %v958_v58 = vadd.f32 %v3221_v35, %v861_v18  ;;  %v1052_v31 = vadd.f32 %v1044_v62, %v955_v25  ;;  %v1164_v39 = vunpack.c.l.bf16 %v2899_v52  ;;  %v1165_v1 = vunpack.c.l.bf16 %v1161_v26 }
 0x1ee   :  { %v1053_v9 = vadd.f32 %v1045_v19, %v956_v40  ;;  %v1054_v5 = vadd.f32 %v1046_v10, %v957_v3  ;;  %v1166_v61 = vunpack.c.l.bf16 %v1162_v4  ;;  %v3222_v43 = vunpack.c.h.bf16 %v2267_v34 }
 0x1ef   :  { %v1055_v14 = vadd.f32 %v1047_v27, %v958_v58  ;;  %v1171_v29 = vadd.f32 %v1163_v44, %v1052_v31  ;;  %v3223_v7 = vunpack.c.h.bf16 %v2277_v49  ;;  %v3224_v16 = vunpack.c.h.bf16 %v2280_v54 }
 0x1f0   :  { %v765_v53 = vadd.f32 %v3222_v43, %v713_v23  ;;  %v1172_v63 = vadd.f32 %v1164_v39, %v1053_v9  ;;  %v1173_v36 = vadd.f32 %v1165_v1, %v1054_v5  ;;  %v3225_v12 = vunpack.c.h.bf16 %v2284_v56  ;;  %v1201_v9 = vpop.permute.xlu0 %1200 }
 0x1f1   :  { %v766_v15 = vadd.f32 %v3223_v7, %v2823_v60  ;;  %v767_v59 = vadd.f32 %v3224_v16, %v2826_v17  ;;  %v1174_v50 = vadd.f32 %v1166_v61, %v1055_v14  ;;  %v1187_v41 = vmul.f32 %v1181_v33, %v1171_v29 }
 0x1f2   :  { %v768_v42 = vadd.f32 %v3225_v12, %v716_v51  ;;  %v3226_v38 = vunpack.c.h.bf16 %v2636_v47  ;;  %v1188_v34 = vmul.f32 %v1181_v33, %v1172_v63  ;;  %v1189_v23 = vmul.f32 %v1181_v33, %v1173_v36  ;;  %v3005_v12 = vld [vmem:[%s3134_s7] sm:$0xff] }
 0x1f3   :  { %v3227_v46 = vunpack.c.h.bf16 %v2641_v45  ;;  %v3228_v49 = vunpack.c.h.bf16 %v2675_v6  ;;  %v1190_v20 = vmul.f32 %v1181_v33, %v1174_v50  ;;  %v3229_v54 = vunpack.c.h.bf16 %v2701_v21 }
 0x1f4   :  { %v862_v62 = vadd.f32 %v3226_v38, %v765_v53  ;;  %v3230_v25 = vunpack.c.h.bf16 %v2724_v48  ;;  %v1048_v56 = vunpack.c.h.bf16 %v2805_v37  ;;  %v3231_v47 = vunpack.c.h.bf16 %v2730_v55 }
 0x1f5   :  { %v863_v18 = vadd.f32 %v3227_v46, %v766_v15  ;;  %v864_v60 = vadd.f32 %v3228_v49, %v767_v59  ;;  %v865_v17 = vadd.f32 %v3229_v54, %v768_v42  ;;  %v3232_v40 = vunpack.c.h.bf16 %v2746_v2  ;;  %v3012_v42 = vld [vmem:[%s3134_s7 + $0x8] sm:$0xff] }
 0x1f6   :  { %v959_v13 = vadd.f32 %v3230_v25, %v862_v62  ;;  %v1049_v45 = vunpack.c.h.bf16 %v2810_v11  ;;  %v1050_v6 = vunpack.c.h.bf16 %v2857_v28  ;;  %v3233_v3 = vunpack.c.h.bf16 %v2757_v22 }
 0x1f7   :  { %v960_v51 = vadd.f32 %v3231_v47, %v863_v18  ;;  %v961_v30 = vadd.f32 %v3232_v40, %v864_v60  ;;  %v1051_v19 = vunpack.c.h.bf16 %v2870_v57  ;;  %v1167_v10 = vunpack.c.h.bf16 %v1159_v32 }
 0x1f8   :  { %v962_v21 = vadd.f32 %v3233_v3, %v865_v17  ;;  %v1056_v48 = vadd.f32 %v1048_v56, %v959_v13  ;;  %v1168_v55 = vunpack.c.h.bf16 %v2899_v52  ;;  %v1169_v58 = vunpack.c.h.bf16 %v1161_v26 }
 0x1f9   :  { %v1057_v35 = vadd.f32 %v1049_v45, %v960_v51  ;;  %v1058_v37 = vadd.f32 %v1050_v6, %v961_v30  ;;  %v1170_v2 = vunpack.c.h.bf16 %v1162_v4  ;;  %v2962_v44 = vadd.f32 %v1197_v24, %v1187_v41 }
 0x1fa   :  { %v1059_v27 = vadd.f32 %v1051_v19, %v962_v21  ;;  %v1175_v31 = vadd.f32 %v1167_v10, %v1056_v48  ;;  %v2964_v5 = vadd.f32 %v1197_v24, %v1188_v34  ;;  %v2966_v22 = vadd.f32 %v1197_v24, %v1189_v23 }
 0x1fb   :  { %v1176_v11 = vadd.f32 %v1168_v55, %v1057_v35  ;;  %v1177_v28 = vadd.f32 %v1169_v58, %v1058_v37  ;;  %v1689_v32 = vclamps-f32 %v2962_v44, 1.0  ;;  %v2969_v1 = vadd.f32 %v1197_v24, %v1190_v20 }
 0x1fc   :  { %v1178_v57 = vadd.f32 %v1170_v2, %v1059_v27  ;;  %v1191_v39 = vmul.f32 %v1185_v0, %v1175_v31  ;;  %v1690_v4 = vclamps-f32 %v2964_v5, 1.0  ;;  %v1691_v61 = vclamps-f32 %v2966_v22, 1.0 }
 0x1fd   :  { %v1192_v52 = vmul.f32 %v1185_v0, %v1176_v11  ;;  %v1193_v26 = vmul.f32 %v1185_v0, %v1177_v28  ;;  %v1692_v63 = vclamps-f32 %v2969_v1, 1.0  ;;  %v3234_v24 = vmov 0.0   ;;  %v1938_v28 = vld [vmem:[%s3131_s4] sm:$0xff]  }
 0x1fe   :  { %v1194_v33 = vmul.f32 %v1185_v0, %v1178_v57  ;;  %v2972_v14 = vadd.f32 %v1201_v9, %v1191_v39  ;;  %v1231_v43 = vadd.f32 %v1690_v4, %v1689_v32  ;;  %v3235_v11 = vmov 6  }
 0x1ff   :  { %v2975_v29 = vadd.f32 %v1201_v9, %v1192_v52  ;;  %v2981_v53 = vadd.f32 %v1201_v9, %v1193_v26  ;;  %v1366_v50 = vadd.f32 %v1692_v63, %v1691_v61 }
 0x200   :  { %v1693_v36 = vclamps-f32 %v2972_v14, 1.0  ;;  %v2985_v7 = vadd.f32 %v1201_v9, %v1194_v33  ;;  %1232 = vadd.xlane.f32.xlu1 %v1231_v43 }
 0x201   :  { %v1694_v0 = vclamps-f32 %v2975_v29, 1.0  ;;  %v1695_v16 = vclamps-f32 %v2981_v53, 1.0 }
 0x202   :  { %v1696_v59 = vclamps-f32 %v2985_v7, 1.0 }
 0x203   :  { %v1234_v15 = vadd.f32 %v1694_v0, %v1693_v36 }
 0x204   :  { %1367 = vadd.xlane.f32.xlu1 %v1366_v50  ;;  %v1369_v41 = vadd.f32 %v1696_v59, %v1695_v16 }
 0x205   :  { %1235 = vadd.xlane.f32.xlu0 %v1234_v15 }
 0x209   :  { %1370 = vadd.xlane.f32.xlu0 %v1369_v41 }
 0x215   :  { %1241 = vrot.lane.b32.xlu1 %v3005_v12, %s2054_s16 }
 0x21f   :  { %1243 = vrot.lane.b32.xlu0 %v3012_v42, %s2054_s16  ;;  %s2006_s16 = scalar_lea.vmem %s1650_s15, 512 }
 0x220   :  { %p2007_p2 = scmp.ne.s32.totalorder %s1650_s15, %s2006_s16  ;;  %p2012_p4 = scmp.lt.s32.totalorder %s2006_s16, %s2006_s16 }
 0x222   :  { %p2013_p5 = por %p2012_p4, %p2011_p3 }
 0x224   :  { %p2014_p6 = pnand %p2013_p5, %p2007_p2 }
 0x28d   :  { %v1233_v38 = vpop.xlane.xlu1 %1232 }
 0x28e   :  { %v1237_v62 = vmul.f32 0.00390625, %v1233_v38 }
 0x290   :  { %v1239_v49 = vmul.f32 %v3005_v12, %v1237_v62 }
 0x291   :  { %v1368_v23 = vpop.xlane.xlu1 %1367 }
 0x292   :  { %v1236_v34 = vpop.xlane.xlu0 %1235  ;;  %v1372_v46 = vmul.f32 0.00390625, %v1368_v23 }
 0x293   :  { %v1238_v18 = vmul.f32 0.00390625, %v1236_v34 }
 0x294   :  { %v1374_v60 = vmul.f32 %v3005_v12, %v1372_v46 }
 0x295   :  { %v3018_v54 = vpop.permute.xlu1 %1241  ;;  %v1240_v56 = vmul.f32 %v3012_v42, %v1238_v18 }
 0x296   :  { %v1371_v20 = vpop.xlane.xlu0 %1370  ;;  %v1247_v25 = vadd.f32 %v3018_v54, %v1239_v49  ;;  %v1376_v13 = vadd.f32 %v1374_v60, %v3018_v54 }
 0x297   :  { %v1373_v17 = vmul.f32 0.00390625, %v1371_v20 }
 0x298   :  { %v1697_v51 = vclamps-f32 %v1247_v25, 1.0  ;;  %v1704_v40 = vclamps-f32 %v1376_v13, 1.0 }
 0x299   :  { %v1375_v47 = vmul.f32 %v3012_v42, %v1373_v17 }
 0x29a   :  { %v3024_v30 = vpop.permute.xlu0 %1243  ;;  %vm1255_vm2 = vcmp.lt.f32.partialorder %v1697_v51, 0.0  ;;  %vm1253_vm3 = vcmp.gt.f32.partialorder %v1697_v51, 0.0  ;;  %vm1384_vm4 = vcmp.lt.f32.partialorder %v1704_v40, 0.0  ;;  %vm1382_vm8 = vcmp.gt.f32.partialorder %v1704_v40, 0.0  ;;  %v67_v51 = vld [vmem:[%s3135_s8] sm:$0x7] }
 0x29b   :  { %v1248_v45 = vadd.f32 %v3024_v30, %v1240_v56  ;;  %v1377_v6 = vadd.f32 %v1375_v47, %v3024_v30  ;;  %v1257_v3 = vsel %vm1255_vm2, -1.0, %v3234_v24  ;;  %v1386_v35 = vsel %vm1384_vm4, -1.0, %v3234_v24 }
 0x29c   :  { %v1259_v48 = vsel %vm1253_vm3, 1.0, %v1257_v3  ;;  %v1388_v27 = vsel %vm1382_vm8, 1.0, %v1386_v35  ;;  %vm1508_vm3 = vcmask 130048  }
 0x29d   :  { %v1698_v21 = vclamps-f32 %v1248_v45, 1.0  ;;  %v1705_v19 = vclamps-f32 %v1377_v6, 1.0 }
 0x29f   :  { %vm1254_vm5 = vcmp.gt.f32.partialorder %v1698_v21, 0.0  ;;  %vm1256_vm6 = vcmp.lt.f32.partialorder %v1698_v21, 0.0  ;;  %vm1385_vm7 = vcmp.lt.f32.partialorder %v1705_v19, 0.0  ;;  %vm1383_vm9 = vcmp.gt.f32.partialorder %v1705_v19, 0.0 }
 0x2a0   :  { %v1258_v10 = vsel %vm1256_vm6, -1.0, %v3234_v24  ;;  %v1387_v58 = vsel %vm1385_vm7, -1.0, %v3234_v24  ;;  %v1290_v21 = vrot.slane %v67_v51, 1 }
 0x2a1   :  { %v1260_v37 = vsel %vm1254_vm5, 1.0, %v1258_v10  ;;  %v1389_v2 = vsel %vm1383_vm9, 1.0, %v1387_v58  ;;  %v1293_v10 = vrot.slane %v67_v51, 2 }
 0x2a2   :  { %v1261_v55 = vpack.c.bf16 %v1260_v37, %v1259_v48  ;;  %v1390_v31 = vpack.c.bf16 %v1389_v2, %v1388_v27 }
 0x2a4   :  { %1264 = vperm.xlu1 %1921, %v1261_v55  }
 0x2a8   :  { %1393 = vperm.xlu1 %1921, %v1390_v31  }
 0x2ac   :  { %1922 = vset.pattern.permute.xlu1 %v3235_v11 }
 0x323   :  { %v1265_v9 = vpop.permute.xlu1 %1264 }
 0x324   :  { %v1273_v57 = vmul.bf16 %v1938_v28, %v1265_v9 }
 0x326   :  { %v1274_v39 = vunpack.c.l.bf16 %v1273_v57  ;;  %v1275_v52 = vunpack.c.h.bf16 %v1273_v57 }
 0x327   :  { %v1394_v26 = vpop.permute.xlu1 %1393 }
 0x328   :  { %v1277_v33 = vsel %vm1276_vm10, %v1274_v39, 0.0  ;;  %v1278_v43 = vsel %vm1276_vm10, %v1275_v52, 0.0  ;;  %v1396_v15 = vmul.bf16 %v1938_v28, %v1394_v26  ;;  %v1939_v52 = vld [vmem:[%s3132_s5] sm:$0xff]   ;;  %s2058_s5 = smov 126  }
 0x329   :  { %v1279_v50 = vadd.f32 %v1278_v43, %v1277_v33 }
 0x32a   :  { %v1397_v41 = vunpack.c.l.bf16 %v1396_v15  ;;  %v1398_v38 = vunpack.c.h.bf16 %v1396_v15 }
 0x32b   :  { %v1280_v62 = vrot.slane %v1279_v50, 4 }
 0x32c   :  { %v1399_v34 = vsel %vm1276_vm10, %v1397_v41, 0.0  ;;  %v1400_v23 = vsel %vm1276_vm10, %v1398_v38, 0.0 }
 0x32d   :  { %v1281_v46 = vadd.f32 %v1280_v62, %v1279_v50  ;;  %v1401_v18 = vadd.f32 %v1400_v23, %v1399_v34 }
 0x32f   :  { %v1282_v49 = vrot.slane %v1281_v46, 2  ;;  %v1402_v60 = vrot.slane %v1401_v18, 4 }
 0x331   :  { %v1283_v20 = vadd.f32 %v1282_v49, %v1281_v46  ;;  %v1403_v17 = vadd.f32 %v1402_v60, %v1401_v18 }
 0x333   :  { %v1284_v25 = vrot.slane %v1283_v20, 1  ;;  %v1404_v13 = vrot.slane %v1403_v17, 2 }
 0x335   :  { %v1285_v56 = vadd.f32 %v1284_v25, %v1283_v20  ;;  %v1405_v47 = vadd.f32 %v1404_v13, %v1403_v17 }
 0x337   :  { %v1286_v40 = vpack.c.bf16 %v1285_v56, %v1285_v56  ;;  %v1406_v45 = vrot.slane %v1405_v47, 1 }
 0x339   :  { %v1287_v6 = vunpack.c.l.bf16 %v1286_v40  ;;  %v1407_v3 = vadd.f32 %v1406_v45, %v1405_v47 }
 0x33b   :  { %v1288_v19 = vadd.f32 %v1287_v6, %v67_v51  ;;  %v1408_v48 = vpack.c.bf16 %v1407_v3, %v1407_v3 }
 0x33d   :  { %v1409_v35 = vunpack.c.l.bf16 %v1408_v48  ;;  %v1292_v37 = vmul.f32 %v1290_v21, %v1288_v19 }
 0x33f   :  { %v1410_v55 = vadd.f32 %v1409_v35, %v67_v51  ;;  %v1295_v58 = vadd.f32 %v1293_v10, %v1292_v37 }
 0x341   :  { %v1700_v27 = vclamps-f32 %v1295_v58, 1.0  ;;  %v1411_v2 = vmul.f32 %v1410_v55, %v1290_v21 }
 0x343   :  { %vm1298_vm11 = vcmp.gt.f32.partialorder %v1700_v27, 0.0  ;;  %vm1299_vm12 = vcmp.lt.f32.partialorder %v1700_v27, 0.0  ;;  %v1412_v31 = vadd.f32 %v1411_v2, %v1293_v10 }
 0x344   :  { %v1300_v11 = vsel %vm1299_vm12, -1.0, %v3234_v24 }
 0x345   :  { %v1301_v28 = vsel %vm1298_vm11, 1.0, %v1300_v11  ;;  %v1706_v9 = vclamps-f32 %v1412_v31, 1.0 }
 0x346   :  { %v1302_v57 = vpack.c.bf16 %v1301_v28, %v1301_v28 }
 0x347   :  { %vm1415_vm13 = vcmp.gt.f32.partialorder %v1706_v9, 0.0  ;;  %vm1416_vm14 = vcmp.lt.f32.partialorder %v1706_v9, 0.0 }
 0x348   :  { %v1304_v39 = vpack.i.b16 %v1302_v57, %v1302_v57  ;;  %v1417_v26 = vsel %vm1416_vm14, -1.0, %v3234_v24 }
 0x349   :  { %v1418_v33 = vsel %vm1415_vm13, 1.0, %v1417_v26 }
 0x34a   :  { %v1309_v43 = vrot.slane %v1304_v39, %v2318_v8  ;;  %v1419_v15 = vpack.c.bf16 %v1418_v33, %v1418_v33 }
 0x34c   :  { %v1316_v50 = vmul.bf16 %v1939_v52, %v1309_v43  ;;  %v1421_v41 = vpack.i.b16 %v1419_v15, %v1419_v15 }
 0x34e   :  { %v1317_v38 = vunpack.c.l.bf16 %v1316_v50  ;;  %v1318_v62 = vunpack.c.h.bf16 %v1316_v50  ;;  %v1426_v34 = vrot.slane %v1421_v41, %v2318_v8 }
 0x350   :  { %v1319_v23 = vsel %vm1276_vm10, %v1317_v38, 0.0  ;;  %v1322_v46 = vsel %vm1276_vm10, %v1318_v62, 0.0  ;;  %v1427_v18 = vmul.bf16 %v1939_v52, %v1426_v34 }
 0x351   :  { %1320 = vadd.xlane.f32.xlu0 %v1319_v23  ;;  %1323 = vadd.xlane.f32.xlu1 %v1322_v46  ;;  %v3236_v23 = vmov 1   ;;  %v3237_v46 = vmov 0  }
 0x352   :  { %v1428_v49 = vunpack.c.l.bf16 %v1427_v18  ;;  %v1429_v20 = vunpack.c.h.bf16 %v1427_v18  ;;  %v68_v18 = vld [vmem:[%s3136_s9] sm:$0xff] }
 0x354   :  { %v1430_v60 = vsel %vm1276_vm10, %v1428_v49, 0.0  ;;  %v1433_v17 = vsel %vm1276_vm10, %v1429_v20, 0.0  ;;  %v3238_v49 = vmov 2  }
 0x355   :  { %1431 = vadd.xlane.f32.xlu0 %v1430_v60  ;;  %v3239_v60 = vmov 3  }
 0x359   :  { %1434 = vadd.xlane.f32.xlu0 %v1433_v17 }
 0x362   :  { %1332 = vrot.lane.b32.xlu1 %v3005_v12, %s2058_s5 }
 0x36f   :  { %1334 = vrot.lane.b32.xlu0 %v3012_v42, %s2058_s5 }
 0x3de   :  { %v1321_v8 = vpop.xlane.xlu0 %1320  ;;  %v1324_v25 = vpop.xlane.xlu1 %1323 }
 0x3df   :  { %v1325_v13 = vpack.c.bf16 %v1324_v25, %v1321_v8 }
 0x3e1   :  { %v1326_v56 = vunpack.c.l.bf16 %v1325_v13  ;;  %v1327_v47 = vunpack.c.h.bf16 %v1325_v13 }
 0x3e2   :  { %v1432_v51 = vpop.xlane.xlu0 %1431  ;;  %v1333_v45 = vpop.permute.xlu1 %1332 }
 0x3e3   :  { %v1328_v40 = vadd.f32 %v3005_v12, %v1326_v56  ;;  %v1329_v6 = vadd.f32 %v3012_v42, %v1327_v47 }
 0x3e5   :  { %v1330_v3 = vmul.f32 %v1328_v40, %v3018_v54  ;;  %v1331_v55 = vmul.f32 %v1329_v6, %v3024_v30 }
 0x3e6   :  { %v1435_v21 = vpop.xlane.xlu0 %1434 }
 0x3e7   :  { %v1436_v19 = vpack.c.bf16 %v1435_v21, %v1432_v51  ;;  %v1338_v48 = vadd.f32 %v1333_v45, %v1330_v3 }
 0x3e9   :  { %v1437_v10 = vunpack.c.l.bf16 %v1436_v19  ;;  %v1438_v35 = vunpack.c.h.bf16 %v1436_v19  ;;  %v1702_v37 = vmul.f32 -1.442695, %v1338_v48 }
 0x3ea   :  { %v1335_v58 = vpop.permute.xlu0 %1334 }
 0x3eb   :  { %v1439_v27 = vadd.f32 %v3005_v12, %v1437_v10  ;;  %v1440_v2 = vadd.f32 %v3012_v42, %v1438_v35  ;;  %1940 = vpow2.f32 %v1702_v37  ;;  %v1339_v31 = vadd.f32 %v1335_v58, %v1331_v55 }
 0x3ed   :  { %v1441_v11 = vmul.f32 %v1439_v27, %v3018_v54  ;;  %v1442_v28 = vmul.f32 %v1440_v2, %v3024_v30  ;;  %v1703_v9 = vmul.f32 -1.442695, %v1339_v31 }
 0x3ef   :  { %v1443_v57 = vadd.f32 %v1441_v11, %v1333_v45  ;;  %1942 = vpow2.f32 %v1703_v9  ;;  %v1444_v39 = vadd.f32 %v1442_v28, %v1335_v58 }
 0x3f1   :  { %v1707_v52 = vmul.f32 -1.442695, %v1443_v57  ;;  %v1708_v26 = vmul.f32 -1.442695, %v1444_v39 }
 0x3f3   :  { %1944 = vpow2.f32 %v1707_v52  ;;  %v1958_v52 = vld [vmem:[%s3127_s0] sm:$0xff] }
 0x3f4   :  { %1946 = vpow2.f32 %v1708_v26 }
 0x3f5   :  { %v1941_v33 = vpop.eup %1940 }
 0x3f6   :  { %v1346_v43 = vadd.f32 1.0, %v1941_v33 }
 0x3f8   :  { %1948 = vrcp.f32 %v1346_v43 }
 0x3f9   :  { %v1943_v12 = vpop.eup %1942 }
 0x3fa   :  { %v1347_v15 = vadd.f32 1.0, %v1943_v12  ;;  %v1959_v12 = vld [vmem:[%s3127_s0 + $0x8] sm:$0xff] }
 0x3fc   :  { %1950 = vrcp.f32 %v1347_v15 }
 0x3fd   :  { %v1945_v42 = vpop.eup %1944 }
 0x3fe   :  { %v1947_v50 = vpop.eup %1946  ;;  %v1451_v41 = vadd.f32 1.0, %v1945_v42 }
 0x3ff   :  { %v1452_v54 = vadd.f32 1.0, %v1947_v50 }
 0x400   :  { %1952 = vrcp.f32 %v1451_v41 }
 0x401   :  { %1954 = vrcp.f32 %v1452_v54 }
 0x402   :  { %v1949_v30 = vpop.eup %1948 }
 0x403   :  { %1354 = vperm.xlu1 %1922, %v1949_v30  }
 0x406   :  { %v1951_v38 = vpop.eup %1950 }
 0x407   :  { %1359 = vperm.xlu1 %1922, %v1951_v38  }
 0x40a   :  { %v1953_v62 = vpop.eup %1952 }
 0x40b   :  { %v1955_v34 = vpop.eup %1954  ;;  %1459 = vperm.xlu0 %1923, %v1953_v62  }
 0x40c   :  { %1464 = vperm.xlu1 %1922, %v1955_v34  }
 0x40f   :  { %1925 = vset.pattern.permute.xlu0 %v3236_v23 }
 0x410   :  { %1924 = vset.pattern.permute.xlu1 %v3237_v46  ;;  %1604 = vperm.xlu0 %1925, %v68_v18   ;;  %v1960_v46 = vld [vmem:[%s3127_s0 + $0x10] sm:$0xff] }
 0x411   :  { %1596 = vperm.xlu1 %1924, %v68_v18  }
 0x414   :  { %1928 = vset.pattern.permute.xlu0 %v3239_v60 }
 0x415   :  { %1926 = vset.pattern.permute.xlu1 %v3238_v49 }
 0x416   :  { %1616 = vperm.xlu1 %1926, %v68_v18  }
 0x41a   :  { %1927 = vset.pattern.permute.xlu1 %v3239_v60  ;;  %v1961_v60 = vld [vmem:[%s3127_s0 + $0x18] sm:$0xff] }
 0x41b   :  { %1624 = vperm.xlu1 %1927, %v68_v18  }
 0x482   :  { %v1355_v20 = vpop.permute.xlu1 %1354 }
 0x483   :  { %v1362_v17 = vmul.f32 %v1689_v32, %v1355_v20  ;;  %v1363_v8 = vmul.f32 %v1690_v4, %v1355_v20 }
 0x485   :  { %vm1479_vm15 = vcmp.lt.f32.partialorder %v1362_v17, 0.0  ;;  %vm1480_vm0 = vcmp.lt.f32.partialorder %v1363_v8, 0.0  ;;  %vm1471_vm1 = vcmp.gt.f32.partialorder %v1362_v17, 0.0  ;;  %vm1472_vm2 = vcmp.gt.f32.partialorder %v1363_v8, 0.0 }
 0x486   :  { %v1360_v25 = vpop.permute.xlu1 %1359  ;;  %v1487_v13 = vsel %vm1479_vm15, -1.0, %v3234_v24  ;;  %v1488_v56 = vsel %vm1480_vm0, -1.0, %v3234_v24 }
 0x487   :  { %v1364_v47 = vmul.f32 %v1693_v36, %v1360_v25  ;;  %v1365_v51 = vmul.f32 %v1694_v0, %v1360_v25  ;;  %v1495_v44 = vsel %vm1471_vm1, 1.0, %v1487_v13  ;;  %v1496_v5 = vsel %vm1472_vm2, 1.0, %v1488_v56 }
 0x489   :  { %vm1475_vm4 = vcmp.gt.f32.partialorder %v1364_v47, 0.0  ;;  %vm1476_vm5 = vcmp.gt.f32.partialorder %v1365_v51, 0.0  ;;  %vm1483_vm6 = vcmp.lt.f32.partialorder %v1364_v47, 0.0  ;;  %vm1484_vm7 = vcmp.lt.f32.partialorder %v1365_v51, 0.0 }
 0x48a   :  { %v1491_v32 = vsel %vm1483_vm6, -1.0, %v3234_v24  ;;  %v1492_v4 = vsel %vm1484_vm7, -1.0, %v3234_v24  ;;  %v1460_v40 = vpop.permute.xlu0 %1459 }
 0x48b   :  { %v1499_v45 = vsel %vm1475_vm4, 1.0, %v1491_v32  ;;  %v1500_v6 = vsel %vm1476_vm5, 1.0, %v1492_v4  ;;  %v1465_v3 = vpop.permute.xlu1 %1464  ;;  %v1467_v14 = vmul.f32 %v1691_v61, %v1460_v40  ;;  %v1468_v29 = vmul.f32 %v1692_v63, %v1460_v40  ;;  %v1507_v63 = vld [vmem:[%s3133_s6] sm:$0xf] }
 0x48c   :  { %v1503_v36 = vpack.c.bf16 %v1499_v45, %v1495_v44  ;;  %v1469_v0 = vmul.f32 %v1695_v16, %v1465_v3  ;;  %v1470_v21 = vmul.f32 %v1696_v59, %v1465_v3  ;;  %v1504_v19 = vpack.c.bf16 %v1500_v6, %v1496_v5 }
 0x48d   :  { %vm1473_vm8 = vcmp.gt.f32.partialorder %v1467_v14, 0.0  ;;  %vm1474_vm9 = vcmp.gt.f32.partialorder %v1468_v29, 0.0  ;;  %vm1481_vm10 = vcmp.lt.f32.partialorder %v1467_v14, 0.0  ;;  %vm1482_vm11 = vcmp.lt.f32.partialorder %v1468_v29, 0.0 }
 0x48e   :  { %vm1477_vm12 = vcmp.gt.f32.partialorder %v1469_v0, 0.0  ;;  %vm1478_vm13 = vcmp.gt.f32.partialorder %v1470_v21, 0.0  ;;  %vm1485_vm14 = vcmp.lt.f32.partialorder %v1469_v0, 0.0  ;;  %vm1486_vm15 = vcmp.lt.f32.partialorder %v1470_v21, 0.0  ;;  %1512 = vmatprep.subr.bf16.mxu0 %v1504_v19 }
 0x48f   :  { %v1493_v22 = vsel %vm1485_vm14, -1.0, %v3234_v24  ;;  %v1494_v1 = vsel %vm1486_vm15, -1.0, %v3234_v24  ;;  %v1489_v61 = vsel %vm1481_vm10, -1.0, %v3234_v24  ;;  %v1490_v53 = vsel %vm1482_vm11, -1.0, %v3234_v24  ;;  %1513 = vmatpush1.bf16.msra.mxu0 %v1503_v36  ;;  %v1605_v37 = vpop.permute.xlu0 %1604 }
 0x490   :  { %v1501_v7 = vsel %vm1477_vm12, 1.0, %v1493_v22  ;;  %v1502_v16 = vsel %vm1478_vm13, 1.0, %v1494_v1  ;;  %v1497_v59 = vsel %vm1473_vm8, 1.0, %v1489_v61  ;;  %v1498_v48 = vsel %vm1474_vm9, 1.0, %v1490_v53  ;;  %v1597_v24 = vpop.permute.xlu1 %1596 }
 0x491   :  { %v1505_v10 = vpack.c.bf16 %v1501_v7, %v1497_v59  ;;  %v1506_v35 = vpack.c.bf16 %v1502_v16, %v1498_v48 }
 0x492   :  { %1709 = vmatmul.mubr.msk.bf16.vlgmr.msra.gmra.mrb[4].mxu0 %vm1508_vm3, %v1507_v63 }
 0x493   :  { %1553 = vmatprep.subr.bf16.mxu1 %v1506_v35 }
 0x494   :  { %1554 = vmatpush1.bf16.msra.mxu1 %v1505_v10 }
 0x495   :  { %v1617_v58 = vpop.permute.xlu1 %1616 }
 0x497   :  { %1710 = vmatmul.mubr.msk.bf16.vlgmr.msra.gmra.mrb[4].mxu1 %vm1508_vm3, %v1507_v63 }
 0x49a   :  { %v1625_v42 = vpop.permute.xlu1 %1624 }
 0x565   :  { %v1546_v55 = vpop.f32.mrb[4].mxu0 }
 0x566   :  { %v1548_v27 = vpop.f32.mrb[5].mxu0  ;;  %v1599_v2 = vmul.f32 %v1597_v24, %v1546_v55 }
 0x567   :  { %v1550_v31 = vpop.f32.mrb[6].mxu0  ;;  %v1600_v11 = vmul.f32 %v1597_v24, %v1548_v27 }
 0x568   :  { %v1551_v28 = vpop.f32.mrb[7].mxu0  ;;  %v1607_v9 = vadd.f32 %v1605_v37, %v1599_v2 }
 0x569   :  { %v1608_v57 = vadd.f32 %v1605_v37, %v1600_v11 }
 0x56a   :  { %v1587_v39 = vpop.f32.mrb[4].mxu1  ;;  %v1611_v26 = vadd.f32 %v1958_v52, %v1607_v9 }
 0x56b   :  { %v1589_v33 = vpop.f32.mrb[5].mxu1  ;;  %v1601_v43 = vmul.f32 %v1597_v24, %v1587_v39  ;;  %v1612_v15 = vadd.f32 %v1959_v12, %v1608_v57 }
 0x56c   :  { %v1602_v50 = vmul.f32 %v1597_v24, %v1589_v33  ;;  %v1591_v41 = vpop.f32.mrb[6].mxu1  ;;  %v1619_v54 = vmul.f32 %v1617_v58, %v1611_v26 }
 0x56d   :  { %v1592_v30 = vpop.f32.mrb[7].mxu1  ;;  %v1609_v38 = vadd.f32 %v1605_v37, %v1601_v43  ;;  %v1620_v62 = vmul.f32 %v1617_v58, %v1612_v15 }
 0x56e   :  { %v1610_v34 = vadd.f32 %v1605_v37, %v1602_v50  ;;  %v1627_v23 = vadd.f32 %v1625_v42, %v1619_v54 }
 0x56f   :  { %v1613_v18 = vadd.f32 %v1960_v46, %v1609_v38  ;;  %v1628_v49 = vadd.f32 %v1625_v42, %v1620_v62 }
 0x570   :  { %v1614_v20 = vadd.f32 %v1961_v60, %v1610_v34  ;;  %v1711_v17 = vclamps-f32 %v1627_v23, 1.0 }
 0x571   :  { %v1621_v8 = vmul.f32 %v1617_v58, %v1613_v18  ;;  %v1712_v25 = vclamps-f32 %v1628_v49, 1.0 }
 0x572   :  { %v1622_v13 = vmul.f32 %v1617_v58, %v1614_v20  ;;  %1639 = vst [vmem:[#allocation7] sm:$0xff] %v1711_v17 }
 0x573   :  { %v1629_v56 = vadd.f32 %v1625_v42, %v1621_v8  ;;  %1640 = vst [vmem:[#allocation7 + $0x8] sm:$0xff] %v1712_v25 }
 0x574   :  { %v1630_v47 = vadd.f32 %v1625_v42, %v1622_v13 }
 0x575   :  { %v1713_v51 = vclamps-f32 %v1629_v56, 1.0 }
 0x576   :  { %v1714_v44 = vclamps-f32 %v1630_v47, 1.0 }
 0x577   :  { %1641 = vst [vmem:[#allocation7 + $0x10] sm:$0xff] %v1713_v51 }
 0x578   :  { %1642 = vst [vmem:[#allocation7 + $0x18] sm:$0xff] %v1714_v44 }
 0x579   :  { %2017 = shalt.err (!%p2014_p6)
}
 0x57a   :  { %s2018_s2 = scalar_lea.hbm %s3137_s10, 512 }
 0x57b   :  { %p2019_p7 = scmp.ne.s32.totalorder %s3137_s10, %s2018_s2  ;;  %p2022_p8 = scmp.lt.u32.totalorder %s2018_s2, %s3137_s10 }
 0x57d   :  { %p2024_p9 = pnand %p2022_p8, %p2019_p7 }
 0x57f   :  { %2027 = shalt.err (!%p2024_p9)
}
 0x580   :  { %1652 = dma.vmem_to_hbm [thread:$0]  %s1650_s15, 512, %s3137_s10, [#allocation4]  }
 0x581   :  { %2032 = dma.done.wait [#allocation4], 512  }
 0x582   :  { %2033 = vsyncadd [#allocation4], 4294966784 }
 0x583   :  { %1656 = vsyncpa [#allocation3], 1 }
 0x584   :  { %1657 = vsyncpa [#allocation6], 1 }
 0x585   :  { %1658 = vsyncpa [#allocation4], 1 }

</bundles_post_ra>
